<compile_context>
chip_gen: v5e
topology: v5e:2x2
jax: 0.10.0
libtpu: 0.0.40
codegen_flags: <defaults>
</compile_context>

<pallas_src>
import functools

import jax
import jax.numpy as jnp
from jax.experimental import pallas as pl
from jax.experimental.pallas import tpu as pltpu

LANE = 128
SUBLANE = 8


def _round_up(x, m):
    return (x + m - 1) // m * m


def _pad_to(x, shape):
    pads = [(0, t - s) for s, t in zip(x.shape, shape)]
    if all(p == (0, 0) for p in pads):
        return x
    return jnp.pad(x, pads)


def _choose_batch_block(B, N):
    """Pick (padded batch, per-step batch block BB).

    BB*N >= ~256 keeps the v-side MXU matmul's M healthy; BB <= 64 bounds per-step VMEM;
    BB must be a multiple of 8 (second-minor block dim) or equal the full batch.  When
    B > BB the grid has >= 2 steps so v7x's two TensorCores both get work.
    """
    target = min(64, max(8, _round_up(-(-256 // max(N, 1)), SUBLANE)))
    if B <= target:
        return B, B                      # one full-batch block (legal: block == full dim)
    return _round_up(B, target), target  # grid length >= 2


def san_kernel(v_ref, q_ref,
               wq_ref, bq_ref, wv_ref, attw_ref,
               l0w_ref, l0b_ref,
               cw1_ref, cb1_ref, cw2_ref, cb2_ref,
               out_ref, *, n_valid):
    BB, Np, H = v_ref.shape
    Ap = l0w_ref.shape[0]
    cdt = v_ref.dtype                       # MXU operand dtype (bf16 in production, f32 in tests)
    f32 = jnp.float32

    v = v_ref[...].reshape(BB * Np, H)      # all regions of all samples stacked: MXU M = BB*Np
    q0 = q_ref[...]                         # (BB, H) question rows

    # ---- fused projections: one q-side matmul, one v-side matmul (f32 accumulate) ----
    qe_all = jnp.dot(q0, wq_ref[...], preferred_element_type=f32) + bq_ref[...]   # (BB, 2Ap)
    img_all = jnp.dot(v, wv_ref[...], preferred_element_type=f32)                 # (BB*Np, 3Ap)

    ques_emb   = qe_all[:, 0 * Ap:1 * Ap]                        # fc11(q)
    ques_emb_1 = qe_all[:, 1 * Ap:2 * Ap]                        # fc14(q)
    img_emb    = img_all[:, 0 * Ap:1 * Ap].reshape(BB, Np, Ap)   # fc12(v)
    img_emb_1  = img_all[:, 1 * Ap:2 * Ap].reshape(BB, Np, Ap)   # fc15(v)
    ie2        = img_all[:, 2 * Ap:3 * Ap].reshape(BB, Np, Ap)   # layers[1](v)

    attw = attw_ref[...]                                         # (Ap, 2) fc13 / layers[2] cols

    def attend(q_emb, img_e, pool_src, col):
        # tanh in f32 (safe on v5e: no bf16 EUP).
        h = jnp.tanh(q_emb[:, None, :] + img_e)                               # (BB, Np, Ap)
        # fc13 / layers[2] as an MXU dot; their biases are dropped (softmax shift-invariant).
        s = jnp.dot(h.reshape(BB * Np, Ap).astype(cdt), attw[:, col:col + 1],
                    preferred_element_type=f32).reshape(BB, Np)               # lane-dense scores
        if n_valid != Np:  # padded regions must get zero softmax weight
            lane = jax.lax.broadcasted_iota(jnp.int32, (BB, Np), 1)
            s = jnp.where(lane < n_valid, s, -1e30)
        m = jnp.max(s, axis=-1, keepdims=True)
        e = jnp.exp(s - m)
        p = e * (1.0 / jnp.sum(e, axis=-1, keepdims=True))                    # exact softmax
        # Attention pooling as a batched (1, Np) x (Np, Ap) MXU matmul (off the VALU/XLU slots).
        ws = jnp.einsum("bxn,bna->bxa", p[:, None, :].astype(cdt), pool_src.astype(cdt),
                        preferred_element_type=f32)
        return ws[:, 0, :]                                                    # (BB, Ap)

    # ---------------- attention stack 1 ----------------
    u1 = ques_emb_1 + attend(ques_emb, img_emb, img_emb_1, 0)

    # ---------------- attention stack 2 ----------------
    qe2 = jnp.dot(u1.astype(cdt), l0w_ref[...], preferred_element_type=f32) + l0b_ref[...]
    u2 = u1 + attend(qe2, ie2, ie2, 1)

    # -------- classifier: weight_norm(Linear) -> ReLU -> weight_norm(Linear) --------
    hid = jnp.maximum(
        jnp.dot(u2.astype(cdt), cw1_ref[...], preferred_element_type=f32) + cb1_ref[...], 0.0)
    out_ref[...] = (jnp.dot(hid.astype(cdt), cw2_ref[...], preferred_element_type=f32)
                    + cb2_ref[...])


def san_forward(v, q, params, compute_dtype=jnp.bfloat16):
    """SanModel forward (eval mode: dropout=identity, v_mask=False)."""
    B, N, H = v.shape
    A = params["l0w"].shape[0]
    H2 = params["cw1"].shape[1]
    ans = params["cb2"].shape[-1]

    Ap, H2p, ANSp = _round_up(A, LANE), _round_up(H2, LANE), _round_up(ans, LANE)
    Np = _round_up(N, SUBLANE)
    cdt, f32 = compute_dtype, jnp.float32

    # --- fuse + pad parameters.  Only output/lane dims are padded to 128 (and the att-sized
    # contraction dims to Ap); the hidden (K) dim of the big v matmul stays unpadded so v
    # never takes a wrapper-side pad pass.  Zero padding keeps padded activations exactly 0.
    wq = jnp.concatenate([_pad_to(params["w11"], (H, Ap)),
                          _pad_to(params["w14"], (H, Ap))], axis=1).astype(cdt)      # (H, 2Ap)
    bq = jnp.concatenate([_pad_to(params["b11"], (1, Ap)),
                          _pad_to(params["b14"], (1, Ap))], axis=1).astype(f32)      # (1, 2Ap)
    wv = jnp.concatenate([_pad_to(params["w12"], (H, Ap)),
                          _pad_to(params["w15"], (H, Ap)),
                          _pad_to(params["l1w"], (H, Ap))], axis=1).astype(cdt)      # (H, 3Ap)
    attw = jnp.concatenate([_pad_to(params["w13"].T, (Ap, 1)),
                            _pad_to(params["l2w"].T, (Ap, 1))], axis=1).astype(cdt)  # (Ap, 2)
    l0w = _pad_to(params["l0w"], (Ap, Ap)).astype(cdt)
    l0b = _pad_to(params["l0b"], (1, Ap)).astype(f32)
    cw1 = _pad_to(params["cw1"], (Ap, H2p)).astype(cdt)
    cb1 = _pad_to(params["cb1"], (1, H2p)).astype(f32)
    cw2 = _pad_to(params["cw2"], (H2p, ANSp)).astype(cdt)
    cb2 = _pad_to(params["cb2"], (1, ANSp)).astype(f32)
    # (b13 / l2b intentionally unused: they shift every region's score equally -> no effect.)

    B_pad, BB = _choose_batch_block(B, N)
    vp = v.astype(cdt)
    q0 = q[:, 0, :].astype(cdt)
    if B_pad != B or Np != N:   # padded regions are masked out of the softmax in-kernel
        vp = jnp.pad(vp, ((0, B_pad - B), (0, Np - N), (0, 0)))
        q0 = jnp.pad(q0, ((0, B_pad - B), (0, 0)))
    grid = (B_pad // BB,)

    weights = [wq, bq, wv, attw, l0w, l0b, cw1, cb1, cw2, cb2]
    kernel = functools.partial(san_kernel, n_valid=N)

    def nbytes(a):
        return int(a.size) * a.dtype.itemsize

    def run(single_buffer_weights):
        if single_buffer_weights:
            wbuf = 1
            wspec = lambda w: pl.BlockSpec(w.shape, lambda b: (0, 0),
                                           pipeline_mode=pl.Buffered(1))
        else:
            wbuf = 2
            wspec = lambda w: pl.BlockSpec(w.shape, lambda b: (0, 0))

        # Explicit VMEM budget: resident weights x buffer count + double-buffered
        # activation/output tiles + f32 intermediates + headroom.
        itm = jnp.dtype(cdt).itemsize
        io = 2 * (BB * Np * H * itm + BB * H * itm + BB * ANSp * 4)
        interm = 4 * BB * Np * 3 * Ap * 4 + 8 * BB * (2 * Ap + H2p + ANSp) * 4
        need = wbuf * sum(nbytes(w) for w in weights) + io + interm + (2 << 20)
        vmem_limit = int(min(100 << 20, max(need, 16 << 20)))

        return pl.pallas_call(
            kernel,
            out_shape=jax.ShapeDtypeStruct((B_pad, ANSp), jnp.float32),
            grid=grid,
            in_specs=[pl.BlockSpec((BB, Np, H), lambda b: (b, 0, 0)),
                      pl.BlockSpec((BB, H), lambda b: (b, 0))]
                     + [wspec(w) for w in weights],
            out_specs=pl.BlockSpec((BB, ANSp), lambda b: (b, 0)),   # lane-dense output slab
            compiler_params=pltpu.CompilerParams(
                dimension_semantics=("parallel",),
                vmem_limit_bytes=vmem_limit),
        )(vp, q0, *weights)

    try:
        out = run(single_buffer_weights=True)
    except Exception:
        # Fallback for jax versions without BlockSpec(pipeline_mode=...) / Buffered(1).
        out = run(single_buffer_weights=False)
    return out[:B, :ans]


def init_params(key, H, ans):
    """Deterministic synthetic parameters. Linear weights stored as (in, out)."""
    A = H
    keys = jax.random.split(key, 20)

    def w(k, shape, scale=0.1):
        return scale * jax.random.normal(k, shape, dtype=jnp.float32)

    p = {}
    p["w11"] = w(keys[0], (H, A));  p["b11"] = w(keys[1], (1, A))        # fc11 (bias)
    p["w12"] = w(keys[2], (H, A))                                        # fc12 (no bias)
    p["w13"] = w(keys[3], (1, A));  p["b13"] = w(keys[4], (1, 1))        # fc13 (att -> 1)
    p["w14"] = w(keys[5], (H, A));  p["b14"] = w(keys[6], (1, A))        # fc14
    p["w15"] = w(keys[7], (H, A))                                        # fc15 (no bias)
    p["l0w"] = w(keys[8], (A, A));  p["l0b"] = w(keys[9], (1, A))        # layers[0]
    p["l1w"] = w(keys[10], (H, A))                                       # layers[1] (no bias)
    p["l2w"] = w(keys[11], (1, A)); p["l2b"] = w(keys[12], (1, 1))       # layers[2] (att -> 1)
    # classifier with weight_norm(dim=None): W_eff = g * V / ||V||_F (folded here)
    v1 = w(keys[13], (H, 2 * H));   g1 = jnp.float32(1.25)
    p["cw1"] = g1 * v1 / jnp.linalg.norm(v1)
    p["cb1"] = w(keys[14], (1, 2 * H))
    v2 = w(keys[15], (2 * H, ans)); g2 = jnp.float32(0.75)
    p["cw2"] = g2 * v2 / jnp.linalg.norm(v2)
    p["cb2"] = w(keys[16], (1, ans))
    return p


def san_ref(v, q, p):
    """Pure-JAX f32 reference mirroring the PyTorch forward (v_mask=False, eval mode)."""
    q0 = q[:, 0, :]
    ques_emb = q0 @ p["w11"] + p["b11"]
    img_emb = jnp.einsum("bnh,ha->bna", v, p["w12"])
    h1 = jnp.tanh(ques_emb[:, None, :] + img_emb)
    h1_emb = jnp.sum(h1 * p["w13"][None], axis=-1, keepdims=True) + p["b13"]
    p1 = jax.nn.softmax(h1_emb, axis=1)
    ques_emb_1 = q0 @ p["w14"] + p["b14"]
    img_emb_1 = jnp.einsum("bnh,ha->bna", v, p["w15"])
    u1 = ques_emb_1 + jnp.sum(img_emb_1 * p1, axis=1)
    qe2 = u1 @ p["l0w"] + p["l0b"]
    ie2 = jnp.einsum("bnh,ha->bna", v, p["l1w"])
    h2 = jnp.tanh(qe2[:, None, :] + ie2)
    h2_emb = jnp.sum(h2 * p["l2w"][None], axis=-1, keepdims=True) + p["l2b"]
    p2 = jax.nn.softmax(h2_emb, axis=1)
    u2 = u1 + jnp.sum(ie2 * p2, axis=1)
    hid = jnp.maximum(u2 @ p["cw1"] + p["cb1"], 0.0)
    return hid @ p["cw2"] + p["cb2"]


if __name__ == "__main__":
    B, N, T, H, ANS = 2, 16, 8, 32, 16
    key = jax.random.PRNGKey(0)
    kv, kq, kp = jax.random.split(key, 3)
    v = jax.random.normal(kv, (B, N, H), dtype=jnp.float32)   # image region features
    q = jax.random.normal(kq, (B, T, H), dtype=jnp.float32)   # question features (token 0 used)
    params = init_params(kp, H, ANS)

    ref = jax.block_until_ready(san_ref(v, q, params))

    # f32 operand path: near-exact vs. the pure-JAX reference.
    out_f32 = jax.block_until_ready(san_forward(v, q, params, compute_dtype=jnp.float32))
    assert out_f32.shape == (B, ANS), out_f32.shape
    err_f32 = float(jnp.max(jnp.abs(out_f32 - ref)))
    assert err_f32 < 1e-2, f"f32 path max |err| = {err_f32}"

    # bf16 MXU-operand path (production configuration): f32 accumulate, looser tolerance.
    out_bf16 = jax.block_until_ready(san_forward(v, q, params, compute_dtype=jnp.bfloat16))
    assert out_bf16.shape == (B, ANS), out_bf16.shape
    err_bf16 = float(jnp.max(jnp.abs(out_bf16 - ref)))
    assert err_bf16 < 5e-2, f"bf16 path max |err| = {err_bf16}"

    print("KERNEL_OK")
</pallas_src>

<mosaic_0001>
module attributes {stable_mosaic.version = 11 : i64} {
  func.func @san_kernel(%arg0: i32, %arg1: memref<2x16x32xf32, #tpu.memory_space<vmem>>, %arg2: memref<2x32xf32, #tpu.memory_space<vmem>>, %arg3: memref<32x256xf32, #tpu.memory_space<vmem>>, %arg4: memref<1x256xf32, #tpu.memory_space<vmem>>, %arg5: memref<32x384xf32, #tpu.memory_space<vmem>>, %arg6: memref<128x2xf32, #tpu.memory_space<vmem>>, %arg7: memref<128x128xf32, #tpu.memory_space<vmem>>, %arg8: memref<1x128xf32, #tpu.memory_space<vmem>>, %arg9: memref<128x128xf32, #tpu.memory_space<vmem>>, %arg10: memref<1x128xf32, #tpu.memory_space<vmem>>, %arg11: memref<128x128xf32, #tpu.memory_space<vmem>>, %arg12: memref<1x128xf32, #tpu.memory_space<vmem>>, %arg13: memref<2x128xf32, #tpu.memory_space<vmem>>) attributes {dimension_semantics = [#tpu.dimension_semantics<parallel>], iteration_bounds = array<i64: 1>, scalar_prefetch = 0 : i64, scratch_operands = 0 : i64, tpu.core_type = #tpu.core_type<tc>, window_params = [{transform_indices = @transform_0, window_bounds = array<i64: 2, 16, 32>}, {transform_indices = @transform_1, window_bounds = array<i64: 2, 32>}, {pipeline_mode = #tpu.pipeline_mode<synchronous>, transform_indices = @transform_2, window_bounds = array<i64: 32, 256>}, {pipeline_mode = #tpu.pipeline_mode<synchronous>, transform_indices = @transform_3, window_bounds = array<i64: 1, 256>}, {pipeline_mode = #tpu.pipeline_mode<synchronous>, transform_indices = @transform_4, window_bounds = array<i64: 32, 384>}, {pipeline_mode = #tpu.pipeline_mode<synchronous>, transform_indices = @transform_5, window_bounds = array<i64: 128, 2>}, {pipeline_mode = #tpu.pipeline_mode<synchronous>, transform_indices = @transform_6, window_bounds = array<i64: 128, 128>}, {pipeline_mode = #tpu.pipeline_mode<synchronous>, transform_indices = @transform_7, window_bounds = array<i64: 1, 128>}, {pipeline_mode = #tpu.pipeline_mode<synchronous>, transform_indices = @transform_8, window_bounds = array<i64: 128, 128>}, {pipeline_mode = #tpu.pipeline_mode<synchronous>, transform_indices = @transform_9, window_bounds = array<i64: 1, 128>}, {pipeline_mode = #tpu.pipeline_mode<synchronous>, transform_indices = @transform_10, window_bounds = array<i64: 128, 128>}, {pipeline_mode = #tpu.pipeline_mode<synchronous>, transform_indices = @transform_11, window_bounds = array<i64: 1, 128>}, {transform_indices = @transform_12, window_bounds = array<i64: 2, 128>}]} {
    %c0 = arith.constant 0 : index
    %c0_0 = arith.constant 0 : index
    %c0_1 = arith.constant 0 : index
    %0 = vector.load %arg1[%c0, %c0_0, %c0_1] : memref<2x16x32xf32, #tpu.memory_space<vmem>>, vector<2x16x32xf32>
    %1 = vector.shape_cast %0 : vector<2x16x32xf32> to vector<32x32xf32>
    %c0_2 = arith.constant 0 : index
    %c0_3 = arith.constant 0 : index
    %2 = vector.load %arg2[%c0_2, %c0_3] : memref<2x32xf32, #tpu.memory_space<vmem>>, vector<2x32xf32>
    %c0_4 = arith.constant 0 : index
    %c0_5 = arith.constant 0 : index
    %3 = vector.load %arg3[%c0_4, %c0_5] : memref<32x256xf32, #tpu.memory_space<vmem>>, vector<32x256xf32>
    %cst = arith.constant dense<0.000000e+00> : vector<2x256xf32>
    %4 = tpu.matmul %2, %3, %cst {dimension_numbers = #tpu.dot_dimension_numbers<[1], [0], [0], [1], [0, 0, 1, 1], [], []>} : vector<2x32xf32>, vector<32x256xf32>, vector<2x256xf32> -> vector<2x256xf32>
    %c0_6 = arith.constant 0 : index
    %c0_7 = arith.constant 0 : index
    %5 = vector.load %arg4[%c0_6, %c0_7] : memref<1x256xf32, #tpu.memory_space<vmem>>, vector<1x256xf32>
    %6 = vector.broadcast %5 : vector<1x256xf32> to vector<2x256xf32>
    %7 = arith.addf %4, %6 : vector<2x256xf32>
    %c0_8 = arith.constant 0 : index
    %c0_9 = arith.constant 0 : index
    %8 = vector.load %arg5[%c0_8, %c0_9] : memref<32x384xf32, #tpu.memory_space<vmem>>, vector<32x384xf32>
    %cst_10 = arith.constant dense<0.000000e+00> : vector<32x384xf32>
    %9 = tpu.matmul %1, %8, %cst_10 {dimension_numbers = #tpu.dot_dimension_numbers<[1], [0], [0], [1], [0, 0, 1, 1], [], []>} : vector<32x32xf32>, vector<32x384xf32>, vector<32x384xf32> -> vector<32x384xf32>
    %10 = vector.extract_strided_slice %7 {offsets = [0, 0], sizes = [2, 128], strides = [1, 1]} : vector<2x256xf32> to vector<2x128xf32>
    %11 = vector.extract_strided_slice %7 {offsets = [0, 128], sizes = [2, 128], strides = [1, 1]} : vector<2x256xf32> to vector<2x128xf32>
    %12 = vector.extract_strided_slice %9 {offsets = [0, 0], sizes = [32, 128], strides = [1, 1]} : vector<32x384xf32> to vector<32x128xf32>
    %13 = vector.shape_cast %12 : vector<32x128xf32> to vector<2x16x128xf32>
    %14 = vector.extract_strided_slice %9 {offsets = [0, 128], sizes = [32, 128], strides = [1, 1]} : vector<32x384xf32> to vector<32x128xf32>
    %15 = vector.shape_cast %14 : vector<32x128xf32> to vector<2x16x128xf32>
    %16 = vector.extract_strided_slice %9 {offsets = [0, 256], sizes = [32, 128], strides = [1, 1]} : vector<32x384xf32> to vector<32x128xf32>
    %17 = vector.shape_cast %16 : vector<32x128xf32> to vector<2x16x128xf32>
    %c0_11 = arith.constant 0 : index
    %c0_12 = arith.constant 0 : index
    %18 = vector.load %arg6[%c0_11, %c0_12] : memref<128x2xf32, #tpu.memory_space<vmem>>, vector<128x2xf32>
    %19 = vector.shape_cast %10 : vector<2x128xf32> to vector<2x1x128xf32>
    %20 = vector.broadcast %19 : vector<2x1x128xf32> to vector<2x16x128xf32>
    %21 = arith.addf %20, %13 : vector<2x16x128xf32>
    %22 = math.tanh %21 : vector<2x16x128xf32>
    %23 = vector.shape_cast %22 : vector<2x16x128xf32> to vector<32x128xf32>
    %24 = vector.extract_strided_slice %18 {offsets = [0, 0], sizes = [128, 1], strides = [1, 1]} : vector<128x2xf32> to vector<128x1xf32>
    %cst_13 = arith.constant dense<0.000000e+00> : vector<32x1xf32>
    %25 = tpu.matmul %23, %24, %cst_13 {dimension_numbers = #tpu.dot_dimension_numbers<[1], [0], [0], [1], [0, 0, 1, 1], [], []>} : vector<32x128xf32>, vector<128x1xf32>, vector<32x1xf32> -> vector<32x1xf32>
    %26 = vector.shape_cast %25 : vector<32x1xf32> to vector<2x16xf32>
    %cst_14 = arith.constant dense<0xFF800000> : vector<2xf32>
    %27 = vector.multi_reduction <maximumf>, %26, %cst_14 [1] : vector<2x16xf32> to vector<2xf32>
    %28 = vector.shape_cast %27 : vector<2xf32> to vector<2x1xf32>
    %29 = vector.broadcast %28 : vector<2x1xf32> to vector<2x16xf32>
    %30 = arith.subf %26, %29 : vector<2x16xf32>
    %31 = math.exp %30 : vector<2x16xf32>
    %cst_15 = arith.constant dense<0.000000e+00> : vector<2xf32>
    %32 = vector.multi_reduction <add>, %31, %cst_15 [1] : vector<2x16xf32> to vector<2xf32>
    %33 = vector.shape_cast %32 : vector<2xf32> to vector<2x1xf32>
    %cst_16 = arith.constant 1.000000e+00 : f32
    %34 = vector.broadcast %cst_16 : f32 to vector<2x1xf32>
    %35 = arith.divf %34, %33 : vector<2x1xf32>
    %36 = vector.broadcast %35 : vector<2x1xf32> to vector<2x16xf32>
    %37 = arith.mulf %31, %36 : vector<2x16xf32>
    %38 = vector.shape_cast %37 : vector<2x16xf32> to vector<2x1x16xf32>
    "tpu.trace_start"() <{level = 10 : i32, message = "bxn,bna->bxa"}> : () -> ()
    %cst_17 = arith.constant dense<0.000000e+00> : vector<2x1x128xf32>
    %39 = tpu.matmul %38, %15, %cst_17 {dimension_numbers = #tpu.dot_dimension_numbers<[2], [1], [1], [2], [0, 0, 0, 1, 1, 2], [0], [0]>} : vector<2x1x16xf32>, vector<2x16x128xf32>, vector<2x1x128xf32> -> vector<2x1x128xf32>
    "tpu.trace_stop"() : () -> ()
    %40 = vector.shape_cast %39 : vector<2x1x128xf32> to vector<2x128xf32>
    %41 = arith.addf %11, %40 : vector<2x128xf32>
    %c0_18 = arith.constant 0 : index
    %c0_19 = arith.constant 0 : index
    %42 = vector.load %arg7[%c0_18, %c0_19] : memref<128x128xf32, #tpu.memory_space<vmem>>, vector<128x128xf32>
    %cst_20 = arith.constant dense<0.000000e+00> : vector<2x128xf32>
    %43 = tpu.matmul %41, %42, %cst_20 {dimension_numbers = #tpu.dot_dimension_numbers<[1], [0], [0], [1], [0, 0, 1, 1], [], []>} : vector<2x128xf32>, vector<128x128xf32>, vector<2x128xf32> -> vector<2x128xf32>
    %c0_21 = arith.constant 0 : index
    %c0_22 = arith.constant 0 : index
    %44 = vector.load %arg8[%c0_21, %c0_22] : memref<1x128xf32, #tpu.memory_space<vmem>>, vector<1x128xf32>
    %45 = vector.broadcast %44 : vector<1x128xf32> to vector<2x128xf32>
    %46 = arith.addf %43, %45 : vector<2x128xf32>
    %47 = vector.shape_cast %46 : vector<2x128xf32> to vector<2x1x128xf32>
    %48 = vector.broadcast %47 : vector<2x1x128xf32> to vector<2x16x128xf32>
    %49 = arith.addf %48, %17 : vector<2x16x128xf32>
    %50 = math.tanh %49 : vector<2x16x128xf32>
    %51 = vector.shape_cast %50 : vector<2x16x128xf32> to vector<32x128xf32>
    %52 = vector.extract_strided_slice %18 {offsets = [0, 1], sizes = [128, 1], strides = [1, 1]} : vector<128x2xf32> to vector<128x1xf32>
    %cst_23 = arith.constant dense<0.000000e+00> : vector<32x1xf32>
    %53 = tpu.matmul %51, %52, %cst_23 {dimension_numbers = #tpu.dot_dimension_numbers<[1], [0], [0], [1], [0, 0, 1, 1], [], []>} : vector<32x128xf32>, vector<128x1xf32>, vector<32x1xf32> -> vector<32x1xf32>
    %54 = vector.shape_cast %53 : vector<32x1xf32> to vector<2x16xf32>
    %cst_24 = arith.constant dense<0xFF800000> : vector<2xf32>
    %55 = vector.multi_reduction <maximumf>, %54, %cst_24 [1] : vector<2x16xf32> to vector<2xf32>
    %56 = vector.shape_cast %55 : vector<2xf32> to vector<2x1xf32>
    %57 = vector.broadcast %56 : vector<2x1xf32> to vector<2x16xf32>
    %58 = arith.subf %54, %57 : vector<2x16xf32>
    %59 = math.exp %58 : vector<2x16xf32>
    %cst_25 = arith.constant dense<0.000000e+00> : vector<2xf32>
    %60 = vector.multi_reduction <add>, %59, %cst_25 [1] : vector<2x16xf32> to vector<2xf32>
    %61 = vector.shape_cast %60 : vector<2xf32> to vector<2x1xf32>
    %cst_26 = arith.constant 1.000000e+00 : f32
    %62 = vector.broadcast %cst_26 : f32 to vector<2x1xf32>
    %63 = arith.divf %62, %61 : vector<2x1xf32>
    %64 = vector.broadcast %63 : vector<2x1xf32> to vector<2x16xf32>
    %65 = arith.mulf %59, %64 : vector<2x16xf32>
    %66 = vector.shape_cast %65 : vector<2x16xf32> to vector<2x1x16xf32>
    "tpu.trace_start"() <{level = 10 : i32, message = "bxn,bna->bxa"}> : () -> ()
    %cst_27 = arith.constant dense<0.000000e+00> : vector<2x1x128xf32>
    %67 = tpu.matmul %66, %17, %cst_27 {dimension_numbers = #tpu.dot_dimension_numbers<[2], [1], [1], [2], [0, 0, 0, 1, 1, 2], [0], [0]>} : vector<2x1x16xf32>, vector<2x16x128xf32>, vector<2x1x128xf32> -> vector<2x1x128xf32>
    "tpu.trace_stop"() : () -> ()
    %68 = vector.shape_cast %67 : vector<2x1x128xf32> to vector<2x128xf32>
    %69 = arith.addf %41, %68 : vector<2x128xf32>
    %c0_28 = arith.constant 0 : index
    %c0_29 = arith.constant 0 : index
    %70 = vector.load %arg9[%c0_28, %c0_29] : memref<128x128xf32, #tpu.memory_space<vmem>>, vector<128x128xf32>
    %cst_30 = arith.constant dense<0.000000e+00> : vector<2x128xf32>
    %71 = tpu.matmul %69, %70, %cst_30 {dimension_numbers = #tpu.dot_dimension_numbers<[1], [0], [0], [1], [0, 0, 1, 1], [], []>} : vector<2x128xf32>, vector<128x128xf32>, vector<2x128xf32> -> vector<2x128xf32>
    %c0_31 = arith.constant 0 : index
    %c0_32 = arith.constant 0 : index
    %72 = vector.load %arg10[%c0_31, %c0_32] : memref<1x128xf32, #tpu.memory_space<vmem>>, vector<1x128xf32>
    %73 = vector.broadcast %72 : vector<1x128xf32> to vector<2x128xf32>
    %74 = arith.addf %71, %73 : vector<2x128xf32>
    %cst_33 = arith.constant 0.000000e+00 : f32
    %75 = vector.broadcast %cst_33 : f32 to vector<2x128xf32>
    %76 = arith.maximumf %74, %75 : vector<2x128xf32>
    %c0_34 = arith.constant 0 : index
    %c0_35 = arith.constant 0 : index
    %77 = vector.load %arg11[%c0_34, %c0_35] : memref<128x128xf32, #tpu.memory_space<vmem>>, vector<128x128xf32>
    %cst_36 = arith.constant dense<0.000000e+00> : vector<2x128xf32>
    %78 = tpu.matmul %76, %77, %cst_36 {dimension_numbers = #tpu.dot_dimension_numbers<[1], [0], [0], [1], [0, 0, 1, 1], [], []>} : vector<2x128xf32>, vector<128x128xf32>, vector<2x128xf32> -> vector<2x128xf32>
    %c0_37 = arith.constant 0 : index
    %c0_38 = arith.constant 0 : index
    %79 = vector.load %arg12[%c0_37, %c0_38] : memref<1x128xf32, #tpu.memory_space<vmem>>, vector<1x128xf32>
    %80 = vector.broadcast %79 : vector<1x128xf32> to vector<2x128xf32>
    %81 = arith.addf %78, %80 : vector<2x128xf32>
    %c0_39 = arith.constant 0 : index
    %c0_40 = arith.constant 0 : index
    %82 = vector.load %arg13[%c0_39, %c0_40] : memref<2x128xf32, #tpu.memory_space<vmem>>, vector<2x128xf32>
    tpu.vector_store %arg13[%c0_39, %c0_40], %81 {strides = array<i32>} : memref<2x128xf32, #tpu.memory_space<vmem>>, vector<2x128xf32>,
    return
  }
  func.func @transform_0(%arg0: i32) -> (i32, i32, i32) {
    %c0_i32 = arith.constant 0 : i32
    %c0_i32_0 = arith.constant 0 : i32
    %c0_i32_1 = arith.constant 0 : i32
    return %arg0, %c0_i32, %c0_i32_0 : i32, i32, i32
  }
  func.func @transform_1(%arg0: i32) -> (i32, i32) {
    %c0_i32 = arith.constant 0 : i32
    %c0_i32_0 = arith.constant 0 : i32
    return %arg0, %c0_i32 : i32, i32
  }
  func.func @transform_2(%arg0: i32) -> (i32, i32) {
    %c0_i32 = arith.constant 0 : i32
    %c0_i32_0 = arith.constant 0 : i32
    %c0_i32_1 = arith.constant 0 : i32
    return %c0_i32, %c0_i32_0 : i32, i32
  }
  func.func @transform_3(%arg0: i32) -> (i32, i32) {
    %c0_i32 = arith.constant 0 : i32
    %c0_i32_0 = arith.constant 0 : i32
    %c0_i32_1 = arith.constant 0 : i32
    return %c0_i32, %c0_i32_0 : i32, i32
  }
  func.func @transform_4(%arg0: i32) -> (i32, i32) {
    %c0_i32 = arith.constant 0 : i32
    %c0_i32_0 = arith.constant 0 : i32
    %c0_i32_1 = arith.constant 0 : i32
    return %c0_i32, %c0_i32_0 : i32, i32
  }
  func.func @transform_5(%arg0: i32) -> (i32, i32) {
    %c0_i32 = arith.constant 0 : i32
    %c0_i32_0 = arith.constant 0 : i32
    %c0_i32_1 = arith.constant 0 : i32
    return %c0_i32, %c0_i32_0 : i32, i32
  }
  func.func @transform_6(%arg0: i32) -> (i32, i32) {
    %c0_i32 = arith.constant 0 : i32
    %c0_i32_0 = arith.constant 0 : i32
    %c0_i32_1 = arith.constant 0 : i32
    return %c0_i32, %c0_i32_0 : i32, i32
  }
  func.func @transform_7(%arg0: i32) -> (i32, i32) {
    %c0_i32 = arith.constant 0 : i32
    %c0_i32_0 = arith.constant 0 : i32
    %c0_i32_1 = arith.constant 0 : i32
    return %c0_i32, %c0_i32_0 : i32, i32
  }
  func.func @transform_8(%arg0: i32) -> (i32, i32) {
    %c0_i32 = arith.constant 0 : i32
    %c0_i32_0 = arith.constant 0 : i32
    %c0_i32_1 = arith.constant 0 : i32
    return %c0_i32, %c0_i32_0 : i32, i32
  }
  func.func @transform_9(%arg0: i32) -> (i32, i32) {
    %c0_i32 = arith.constant 0 : i32
    %c0_i32_0 = arith.constant 0 : i32
    %c0_i32_1 = arith.constant 0 : i32
    return %c0_i32, %c0_i32_0 : i32, i32
  }
  func.func @transform_10(%arg0: i32) -> (i32, i32) {
    %c0_i32 = arith.constant 0 : i32
    %c0_i32_0 = arith.constant 0 : i32
    %c0_i32_1 = arith.constant 0 : i32
    return %c0_i32, %c0_i32_0 : i32, i32
  }
  func.func @transform_11(%arg0: i32) -> (i32, i32) {
    %c0_i32 = arith.constant 0 : i32
    %c0_i32_0 = arith.constant 0 : i32
    %c0_i32_1 = arith.constant 0 : i32
    return %c0_i32, %c0_i32_0 : i32, i32
  }
  func.func @transform_12(%arg0: i32) -> (i32, i32) {
    %c0_i32 = arith.constant 0 : i32
    %c0_i32_0 = arith.constant 0 : i32
    return %arg0, %c0_i32 : i32, i32
  }
}

module attributes {stable_mosaic.version = 11 : i64} {
  func.func @san_kernel(%arg0: i32, %arg1: memref<2x16x32xf32, #tpu.memory_space<vmem>>, %arg2: memref<2x32xf32, #tpu.memory_space<vmem>>, %arg3: memref<32x256xf32, #tpu.memory_space<vmem>>, %arg4: memref<1x256xf32, #tpu.memory_space<vmem>>, %arg5: memref<32x384xf32, #tpu.memory_space<vmem>>, %arg6: memref<128x2xf32, #tpu.memory_space<vmem>>, %arg7: memref<128x128xf32, #tpu.memory_space<vmem>>, %arg8: memref<1x128xf32, #tpu.memory_space<vmem>>, %arg9: memref<128x128xf32, #tpu.memory_space<vmem>>, %arg10: memref<1x128xf32, #tpu.memory_space<vmem>>, %arg11: memref<128x128xf32, #tpu.memory_space<vmem>>, %arg12: memref<1x128xf32, #tpu.memory_space<vmem>>, %arg13: memref<2x128xf32, #tpu.memory_space<vmem>>) attributes {dimension_semantics = [#tpu.dimension_semantics<parallel>], iteration_bounds = array<i64: 1>, scalar_prefetch = 0 : i64, scratch_operands = 0 : i64, tpu.core_type = #tpu.core_type<tc>, window_params = [{transform_indices = @transform_0, window_bounds = array<i64: 2, 16, 32>}, {transform_indices = @transform_1, window_bounds = array<i64: 2, 32>}, {pipeline_mode = #tpu.pipeline_mode<synchronous>, transform_indices = @transform_2, window_bounds = array<i64: 32, 256>}, {pipeline_mode = #tpu.pipeline_mode<synchronous>, transform_indices = @transform_3, window_bounds = array<i64: 1, 256>}, {pipeline_mode = #tpu.pipeline_mode<synchronous>, transform_indices = @transform_4, window_bounds = array<i64: 32, 384>}, {pipeline_mode = #tpu.pipeline_mode<synchronous>, transform_indices = @transform_5, window_bounds = array<i64: 128, 2>}, {pipeline_mode = #tpu.pipeline_mode<synchronous>, transform_indices = @transform_6, window_bounds = array<i64: 128, 128>}, {pipeline_mode = #tpu.pipeline_mode<synchronous>, transform_indices = @transform_7, window_bounds = array<i64: 1, 128>}, {pipeline_mode = #tpu.pipeline_mode<synchronous>, transform_indices = @transform_8, window_bounds = array<i64: 128, 128>}, {pipeline_mode = #tpu.pipeline_mode<synchronous>, transform_indices = @transform_9, window_bounds = array<i64: 1, 128>}, {pipeline_mode = #tpu.pipeline_mode<synchronous>, transform_indices = @transform_10, window_bounds = array<i64: 128, 128>}, {pipeline_mode = #tpu.pipeline_mode<synchronous>, transform_indices = @transform_11, window_bounds = array<i64: 1, 128>}, {transform_indices = @transform_12, window_bounds = array<i64: 2, 128>}]} {
    %c0 = arith.constant 0 : index
    %c0_0 = arith.constant 0 : index
    %c0_1 = arith.constant 0 : index
    %0 = vector.load %arg1[%c0, %c0_0, %c0_1] : memref<2x16x32xf32, #tpu.memory_space<vmem>>, vector<2x16x32xf32>
    %1 = vector.shape_cast %0 : vector<2x16x32xf32> to vector<32x32xf32>
    %c0_2 = arith.constant 0 : index
    %c0_3 = arith.constant 0 : index
    %2 = vector.load %arg2[%c0_2, %c0_3] : memref<2x32xf32, #tpu.memory_space<vmem>>, vector<2x32xf32>
    %c0_4 = arith.constant 0 : index
    %c0_5 = arith.constant 0 : index
    %3 = vector.load %arg3[%c0_4, %c0_5] : memref<32x256xf32, #tpu.memory_space<vmem>>, vector<32x256xf32>
    %cst = arith.constant dense<0.000000e+00> : vector<2x256xf32>
    %4 = tpu.matmul %2, %3, %cst {dimension_numbers = #tpu.dot_dimension_numbers<[1], [0], [0], [1], [0, 0, 1, 1], [], []>} : vector<2x32xf32>, vector<32x256xf32>, vector<2x256xf32> -> vector<2x256xf32>
    %c0_6 = arith.constant 0 : index
    %c0_7 = arith.constant 0 : index
    %5 = vector.load %arg4[%c0_6, %c0_7] : memref<1x256xf32, #tpu.memory_space<vmem>>, vector<1x256xf32>
    %6 = vector.broadcast %5 : vector<1x256xf32> to vector<2x256xf32>
    %7 = arith.addf %4, %6 : vector<2x256xf32>
    %c0_8 = arith.constant 0 : index
    %c0_9 = arith.constant 0 : index
    %8 = vector.load %arg5[%c0_8, %c0_9] : memref<32x384xf32, #tpu.memory_space<vmem>>, vector<32x384xf32>
    %cst_10 = arith.constant dense<0.000000e+00> : vector<32x384xf32>
    %9 = tpu.matmul %1, %8, %cst_10 {dimension_numbers = #tpu.dot_dimension_numbers<[1], [0], [0], [1], [0, 0, 1, 1], [], []>} : vector<32x32xf32>, vector<32x384xf32>, vector<32x384xf32> -> vector<32x384xf32>
    %10 = vector.extract_strided_slice %7 {offsets = [0, 0], sizes = [2, 128], strides = [1, 1]} : vector<2x256xf32> to vector<2x128xf32>
    %11 = vector.extract_strided_slice %7 {offsets = [0, 128], sizes = [2, 128], strides = [1, 1]} : vector<2x256xf32> to vector<2x128xf32>
    %12 = vector.extract_strided_slice %9 {offsets = [0, 0], sizes = [32, 128], strides = [1, 1]} : vector<32x384xf32> to vector<32x128xf32>
    %13 = vector.shape_cast %12 : vector<32x128xf32> to vector<2x16x128xf32>
    %14 = vector.extract_strided_slice %9 {offsets = [0, 128], sizes = [32, 128], strides = [1, 1]} : vector<32x384xf32> to vector<32x128xf32>
    %15 = vector.shape_cast %14 : vector<32x128xf32> to vector<2x16x128xf32>
    %16 = vector.extract_strided_slice %9 {offsets = [0, 256], sizes = [32, 128], strides = [1, 1]} : vector<32x384xf32> to vector<32x128xf32>
    %17 = vector.shape_cast %16 : vector<32x128xf32> to vector<2x16x128xf32>
    %c0_11 = arith.constant 0 : index
    %c0_12 = arith.constant 0 : index
    %18 = vector.load %arg6[%c0_11, %c0_12] : memref<128x2xf32, #tpu.memory_space<vmem>>, vector<128x2xf32>
    %19 = vector.shape_cast %10 : vector<2x128xf32> to vector<2x1x128xf32>
    %20 = vector.broadcast %19 : vector<2x1x128xf32> to vector<2x16x128xf32>
    %21 = arith.addf %20, %13 : vector<2x16x128xf32>
    %22 = math.tanh %21 : vector<2x16x128xf32>
    %23 = vector.shape_cast %22 : vector<2x16x128xf32> to vector<32x128xf32>
    %24 = vector.extract_strided_slice %18 {offsets = [0, 0], sizes = [128, 1], strides = [1, 1]} : vector<128x2xf32> to vector<128x1xf32>
    %cst_13 = arith.constant dense<0.000000e+00> : vector<32x1xf32>
    %25 = tpu.matmul %23, %24, %cst_13 {dimension_numbers = #tpu.dot_dimension_numbers<[1], [0], [0], [1], [0, 0, 1, 1], [], []>} : vector<32x128xf32>, vector<128x1xf32>, vector<32x1xf32> -> vector<32x1xf32>
    %26 = vector.shape_cast %25 : vector<32x1xf32> to vector<2x16xf32>
    %cst_14 = arith.constant dense<0xFF800000> : vector<2xf32>
    %27 = vector.multi_reduction <maximumf>, %26, %cst_14 [1] : vector<2x16xf32> to vector<2xf32>
    %28 = vector.shape_cast %27 : vector<2xf32> to vector<2x1xf32>
    %29 = vector.broadcast %28 : vector<2x1xf32> to vector<2x16xf32>
    %30 = arith.subf %26, %29 : vector<2x16xf32>
    %31 = math.exp %30 : vector<2x16xf32>
    %cst_15 = arith.constant dense<0.000000e+00> : vector<2xf32>
    %32 = vector.multi_reduction <add>, %31, %cst_15 [1] : vector<2x16xf32> to vector<2xf32>
    %33 = vector.shape_cast %32 : vector<2xf32> to vector<2x1xf32>
    %cst_16 = arith.constant 1.000000e+00 : f32
    %34 = vector.broadcast %cst_16 : f32 to vector<2x1xf32>
    %35 = arith.divf %34, %33 : vector<2x1xf32>
    %36 = vector.broadcast %35 : vector<2x1xf32> to vector<2x16xf32>
    %37 = arith.mulf %31, %36 : vector<2x16xf32>
    %38 = vector.shape_cast %37 : vector<2x16xf32> to vector<2x1x16xf32>
    "tpu.trace_start"() <{level = 10 : i32, message = "bxn,bna->bxa"}> : () -> ()
    %cst_17 = arith.constant dense<0.000000e+00> : vector<2x1x128xf32>
    %39 = tpu.matmul %38, %15, %cst_17 {dimension_numbers = #tpu.dot_dimension_numbers<[2], [1], [1], [2], [0, 0, 0, 1, 1, 2], [0], [0]>} : vector<2x1x16xf32>, vector<2x16x128xf32>, vector<2x1x128xf32> -> vector<2x1x128xf32>
    "tpu.trace_stop"() : () -> ()
    %40 = vector.shape_cast %39 : vector<2x1x128xf32> to vector<2x128xf32>
    %41 = arith.addf %11, %40 : vector<2x128xf32>
    %c0_18 = arith.constant 0 : index
    %c0_19 = arith.constant 0 : index
    %42 = vector.load %arg7[%c0_18, %c0_19] : memref<128x128xf32, #tpu.memory_space<vmem>>, vector<128x128xf32>
    %cst_20 = arith.constant dense<0.000000e+00> : vector<2x128xf32>
    %43 = tpu.matmul %41, %42, %cst_20 {dimension_numbers = #tpu.dot_dimension_numbers<[1], [0], [0], [1], [0, 0, 1, 1], [], []>} : vector<2x128xf32>, vector<128x128xf32>, vector<2x128xf32> -> vector<2x128xf32>
    %c0_21 = arith.constant 0 : index
    %c0_22 = arith.constant 0 : index
    %44 = vector.load %arg8[%c0_21, %c0_22] : memref<1x128xf32, #tpu.memory_space<vmem>>, vector<1x128xf32>
    %45 = vector.broadcast %44 : vector<1x128xf32> to vector<2x128xf32>
    %46 = arith.addf %43, %45 : vector<2x128xf32>
    %47 = vector.shape_cast %46 : vector<2x128xf32> to vector<2x1x128xf32>
    %48 = vector.broadcast %47 : vector<2x1x128xf32> to vector<2x16x128xf32>
    %49 = arith.addf %48, %17 : vector<2x16x128xf32>
    %50 = math.tanh %49 : vector<2x16x128xf32>
    %51 = vector.shape_cast %50 : vector<2x16x128xf32> to vector<32x128xf32>
    %52 = vector.extract_strided_slice %18 {offsets = [0, 1], sizes = [128, 1], strides = [1, 1]} : vector<128x2xf32> to vector<128x1xf32>
    %cst_23 = arith.constant dense<0.000000e+00> : vector<32x1xf32>
    %53 = tpu.matmul %51, %52, %cst_23 {dimension_numbers = #tpu.dot_dimension_numbers<[1], [0], [0], [1], [0, 0, 1, 1], [], []>} : vector<32x128xf32>, vector<128x1xf32>, vector<32x1xf32> -> vector<32x1xf32>
    %54 = vector.shape_cast %53 : vector<32x1xf32> to vector<2x16xf32>
    %cst_24 = arith.constant dense<0xFF800000> : vector<2xf32>
    %55 = vector.multi_reduction <maximumf>, %54, %cst_24 [1] : vector<2x16xf32> to vector<2xf32>
    %56 = vector.shape_cast %55 : vector<2xf32> to vector<2x1xf32>
    %57 = vector.broadcast %56 : vector<2x1xf32> to vector<2x16xf32>
    %58 = arith.subf %54, %57 : vector<2x16xf32>
    %59 = math.exp %58 : vector<2x16xf32>
    %cst_25 = arith.constant dense<0.000000e+00> : vector<2xf32>
    %60 = vector.multi_reduction <add>, %59, %cst_25 [1] : vector<2x16xf32> to vector<2xf32>
    %61 = vector.shape_cast %60 : vector<2xf32> to vector<2x1xf32>
    %cst_26 = arith.constant 1.000000e+00 : f32
    %62 = vector.broadcast %cst_26 : f32 to vector<2x1xf32>
    %63 = arith.divf %62, %61 : vector<2x1xf32>
    %64 = vector.broadcast %63 : vector<2x1xf32> to vector<2x16xf32>
    %65 = arith.mulf %59, %64 : vector<2x16xf32>
    %66 = vector.shape_cast %65 : vector<2x16xf32> to vector<2x1x16xf32>
    "tpu.trace_start"() <{level = 10 : i32, message = "bxn,bna->bxa"}> : () -> ()
    %cst_27 = arith.constant dense<0.000000e+00> : vector<2x1x128xf32>
    %67 = tpu.matmul %66, %17, %cst_27 {dimension_numbers = #tpu.dot_dimension_numbers<[2], [1], [1], [2], [0, 0, 0, 1, 1, 2], [0], [0]>} : vector<2x1x16xf32>, vector<2x16x128xf32>, vector<2x1x128xf32> -> vector<2x1x128xf32>
    "tpu.trace_stop"() : () -> ()
    %68 = vector.shape_cast %67 : vector<2x1x128xf32> to vector<2x128xf32>
    %69 = arith.addf %41, %68 : vector<2x128xf32>
    %c0_28 = arith.constant 0 : index
    %c0_29 = arith.constant 0 : index
    %70 = vector.load %arg9[%c0_28, %c0_29] : memref<128x128xf32, #tpu.memory_space<vmem>>, vector<128x128xf32>
    %cst_30 = arith.constant dense<0.000000e+00> : vector<2x128xf32>
    %71 = tpu.matmul %69, %70, %cst_30 {dimension_numbers = #tpu.dot_dimension_numbers<[1], [0], [0], [1], [0, 0, 1, 1], [], []>} : vector<2x128xf32>, vector<128x128xf32>, vector<2x128xf32> -> vector<2x128xf32>
    %c0_31 = arith.constant 0 : index
    %c0_32 = arith.constant 0 : index
    %72 = vector.load %arg10[%c0_31, %c0_32] : memref<1x128xf32, #tpu.memory_space<vmem>>, vector<1x128xf32>
    %73 = vector.broadcast %72 : vector<1x128xf32> to vector<2x128xf32>
    %74 = arith.addf %71, %73 : vector<2x128xf32>
    %cst_33 = arith.constant 0.000000e+00 : f32
    %75 = vector.broadcast %cst_33 : f32 to vector<2x128xf32>
    %76 = arith.maximumf %74, %75 : vector<2x128xf32>
    %c0_34 = arith.constant 0 : index
    %c0_35 = arith.constant 0 : index
    %77 = vector.load %arg11[%c0_34, %c0_35] : memref<128x128xf32, #tpu.memory_space<vmem>>, vector<128x128xf32>
    %cst_36 = arith.constant dense<0.000000e+00> : vector<2x128xf32>
    %78 = tpu.matmul %76, %77, %cst_36 {dimension_numbers = #tpu.dot_dimension_numbers<[1], [0], [0], [1], [0, 0, 1, 1], [], []>} : vector<2x128xf32>, vector<128x128xf32>, vector<2x128xf32> -> vector<2x128xf32>
    %c0_37 = arith.constant 0 : index
    %c0_38 = arith.constant 0 : index
    %79 = vector.load %arg12[%c0_37, %c0_38] : memref<1x128xf32, #tpu.memory_space<vmem>>, vector<1x128xf32>
    %80 = vector.broadcast %79 : vector<1x128xf32> to vector<2x128xf32>
    %81 = arith.addf %78, %80 : vector<2x128xf32>
    %c0_39 = arith.constant 0 : index
    %c0_40 = arith.constant 0 : index
    %82 = vector.load %arg13[%c0_39, %c0_40] : memref<2x128xf32, #tpu.memory_space<vmem>>, vector<2x128xf32>
    tpu.vector_store %arg13[%c0_39, %c0_40], %81 {strides = array<i32>} : memref<2x128xf32, #tpu.memory_space<vmem>>, vector<2x128xf32>,
    return
  }
  func.func @transform_0(%arg0: i32) -> (i32, i32, i32) {
    %c0_i32 = arith.constant 0 : i32
    %c0_i32_0 = arith.constant 0 : i32
    %c0_i32_1 = arith.constant 0 : i32
    return %arg0, %c0_i32, %c0_i32_0 : i32, i32, i32
  }
  func.func @transform_1(%arg0: i32) -> (i32, i32) {
    %c0_i32 = arith.constant 0 : i32
    %c0_i32_0 = arith.constant 0 : i32
    return %arg0, %c0_i32 : i32, i32
  }
  func.func @transform_2(%arg0: i32) -> (i32, i32) {
    %c0_i32 = arith.constant 0 : i32
    %c0_i32_0 = arith.constant 0 : i32
    %c0_i32_1 = arith.constant 0 : i32
    return %c0_i32, %c0_i32_0 : i32, i32
  }
  func.func @transform_3(%arg0: i32) -> (i32, i32) {
    %c0_i32 = arith.constant 0 : i32
    %c0_i32_0 = arith.constant 0 : i32
    %c0_i32_1 = arith.constant 0 : i32
    return %c0_i32, %c0_i32_0 : i32, i32
  }
  func.func @transform_4(%arg0: i32) -> (i32, i32) {
    %c0_i32 = arith.constant 0 : i32
    %c0_i32_0 = arith.constant 0 : i32
    %c0_i32_1 = arith.constant 0 : i32
    return %c0_i32, %c0_i32_0 : i32, i32
  }
  func.func @transform_5(%arg0: i32) -> (i32, i32) {
    %c0_i32 = arith.constant 0 : i32
    %c0_i32_0 = arith.constant 0 : i32
    %c0_i32_1 = arith.constant 0 : i32
    return %c0_i32, %c0_i32_0 : i32, i32
  }
  func.func @transform_6(%arg0: i32) -> (i32, i32) {
    %c0_i32 = arith.constant 0 : i32
    %c0_i32_0 = arith.constant 0 : i32
    %c0_i32_1 = arith.constant 0 : i32
    return %c0_i32, %c0_i32_0 : i32, i32
  }
  func.func @transform_7(%arg0: i32) -> (i32, i32) {
    %c0_i32 = arith.constant 0 : i32
    %c0_i32_0 = arith.constant 0 : i32
    %c0_i32_1 = arith.constant 0 : i32
    return %c0_i32, %c0_i32_0 : i32, i32
  }
  func.func @transform_8(%arg0: i32) -> (i32, i32) {
    %c0_i32 = arith.constant 0 : i32
    %c0_i32_0 = arith.constant 0 : i32
    %c0_i32_1 = arith.constant 0 : i32
    return %c0_i32, %c0_i32_0 : i32, i32
  }
  func.func @transform_9(%arg0: i32) -> (i32, i32) {
    %c0_i32 = arith.constant 0 : i32
    %c0_i32_0 = arith.constant 0 : i32
    %c0_i32_1 = arith.constant 0 : i32
    return %c0_i32, %c0_i32_0 : i32, i32
  }
  func.func @transform_10(%arg0: i32) -> (i32, i32) {
    %c0_i32 = arith.constant 0 : i32
    %c0_i32_0 = arith.constant 0 : i32
    %c0_i32_1 = arith.constant 0 : i32
    return %c0_i32, %c0_i32_0 : i32, i32
  }
  func.func @transform_11(%arg0: i32) -> (i32, i32) {
    %c0_i32 = arith.constant 0 : i32
    %c0_i32_0 = arith.constant 0 : i32
    %c0_i32_1 = arith.constant 0 : i32
    return %c0_i32, %c0_i32_0 : i32, i32
  }
  func.func @transform_12(%arg0: i32) -> (i32, i32) {
    %c0_i32 = arith.constant 0 : i32
    %c0_i32_0 = arith.constant 0 : i32
    return %arg0, %c0_i32 : i32, i32
  }
}

</mosaic_0001>

<bundles_post_ra>
// kernel: tpu_custom_call.1
= control target key start
LH: loop header
LB: loop body
LE: loop exit
PB: predicated region body
PF: predicated region fallthrough
CT: control target
= control target key end

     0   :  { %17 = vsyncpa [#allocation3], 0  ;;  %s1645_s0 = inlined_call_operand.hbm [shape: f32[2,16,32], index: 0, kind: input, shape index: {}]   ;;  %s1646_s1 = inlined_call_operand.vmem [shape: f32[2,32], index: 1, kind: input, shape index: {}]   ;;  %s1647_s2 = inlined_call_operand.hbm [shape: f32[32,256], index: 2, kind: input, shape index: {}]   ;;  %s1648_s3 = inlined_call_operand.hbm [shape: f32[1,256], index: 3, kind: input, shape index: {}]   ;;  %s1649_s4 = inlined_call_operand.hbm [shape: f32[32,384], index: 4, kind: input, shape index: {}]   ;;  %s1650_s5 = inlined_call_operand.vmem [shape: f32[128,2], index: 5, kind: input, shape index: {}]   ;;  %s1651_s6 = inlined_call_operand.vmem [shape: f32[128,128], index: 6, kind: input, shape index: {}]   ;;  %s1652_s7 = inlined_call_operand.vmem [shape: f32[1,128], index: 7, kind: input, shape index: {}]   ;;  %s1653_s8 = inlined_call_operand.hbm [shape: f32[128,128], index: 8, kind: input, shape index: {}]   ;;  %s1654_s9 = inlined_call_operand.vmem [shape: f32[1,128], index: 9, kind: input, shape index: {}]   ;;  %s1655_s10 = inlined_call_operand.hbm [shape: f32[128,128], index: 10, kind: input, shape index: {}]   ;;  %s1656_s11 = inlined_call_operand.vmem [shape: f32[1,128], index: 11, kind: input, shape index: {}]   ;;  %s1657_s12 = inlined_call_operand.hbm [shape: f32[2,128], index: 12, kind: output, shape index: {}]  }
   0x1   :  { %18 = vsyncpa [#allocation6], 0 }
   0x2   :  { %19 = vsyncpa [#allocation9], 0 }
   0x3   :  { %20 = vsyncpa [#allocation12], 0  ;;  %s41_s23 = sshll.u32 %s1647_s2, 4  ;;  %s42_s23 = int_to_ptr.hbm [resolvable:$true] %s41_s23 }
   0x4   :  { %21 = vsyncpa [#allocation4], 0  ;;  %s1250_s24 = smov [#allocation5]   ;;  %s65_s28 = sshll.u32 %s1649_s4, 4  ;;  %s66_s28 = int_to_ptr.hbm [resolvable:$true] %s65_s28 }
   0x5   :  { %s43_s25 = sshll.u32 %s1250_s24, 4  ;;  %s1251_s29 = smov 256   ;;  %s44_s25 = int_to_ptr.vmem [resolvable:$true] %s43_s25 }
   0x6   :  { %s1252_s30 = smov 16   ;;  %s1253_s13 = smov [#allocation8]  }
   0x7   :  { %49 = dma.hbm_to_vmem [thread:$0]  %s42_s23, 1024, %s44_s25, [#allocation6], %s1251_s29, %s1251_s29, %s1252_s30  }
   0x8   :  { %s67_s14 = sshll.u32 %s1253_s13, 4  ;;  %s1254_s15 = smov 384   ;;  %s68_s14 = int_to_ptr.vmem [resolvable:$true] %s67_s14 }
   0x9   :  { %s1255_s16 = smov 24   ;;  %s26_s18 = sshll.u32 %s1645_s0, 4  ;;  %s27_s18 = int_to_ptr.hbm [resolvable:$true] %s26_s18 }
   0xa   :  { %73 = dma.hbm_to_vmem [thread:$0]  %s66_s28, 1536, %s68_s14, [#allocation9], %s1254_s15, %s1254_s15, %s1255_s16  }
   0xb   :  { %s1256_s19 = smov [#allocation2]   ;;  %s55_s22 = sshll.u32 %s1648_s3, 4  ;;  %s56_s22 = int_to_ptr.hbm [resolvable:$true] %s55_s22 }
   0xc   :  { %s28_s20 = sshll.u32 %s1256_s19, 4  ;;  %s1257_s23 = smov 128   ;;  %s29_s20 = int_to_ptr.vmem [resolvable:$true] %s28_s20 }
   0xd   :  { %s1258_s24 = smov 8   ;;  %s1259_s25 = smov [#allocation7]  }
   0xe   :  { %34 = dma.hbm_to_vmem [thread:$0]  %s27_s18, 512, %s29_s20, [#allocation3], %s1257_s23, %s1257_s23, %s1258_s24  }
   0xf   :  { %s57_s26 = sshll.u32 %s1259_s25, 4  ;;  %s84_s29 = sshll.u32 %s1653_s8, 4  ;;  %s58_s26 = int_to_ptr.vmem [resolvable:$true] %s57_s26  ;;  %s85_s29 = int_to_ptr.hbm [resolvable:$true] %s84_s29 }
  0x10   :  { %60 = dma.hbm_to_vmem [thread:$0]  %s56_s22, 32, %s58_s26, [#allocation6]  }
  0x11   :  { %s99_s13 = sshll.u32 %s1655_s10, 4  ;;  %s1260_s14 = smov [#allocation10]   ;;  %s100_s13 = int_to_ptr.hbm [resolvable:$true] %s99_s13 }
  0x12   :  { %s86_s15 = sshll.u32 %s1260_s14, 4  ;;  %s1261_s3 = smov [#allocation11]   ;;  %s87_s15 = int_to_ptr.vmem [resolvable:$true] %s86_s15 }
  0x13   :  { %92 = dma.hbm_to_vmem [thread:$0]  %s85_s29, 2048, %s87_s15, [#allocation9], %s1257_s23, %s1257_s23, %s1258_s24  }
  0x14   :  { %s101_s16 = sshll.u32 %s1261_s3, 4  ;;  %s102_s16 = int_to_ptr.vmem [resolvable:$true] %s101_s16 }
  0x15   :  { %107 = dma.hbm_to_vmem [thread:$0]  %s100_s13, 2048, %s102_s16, [#allocation12], %s1257_s23, %s1257_s23, %s1258_s24  }
  0x16   :  { %1240 = dma.done.wait [#allocation3], 512  }
  0x17   :  { %1241 = vsyncadd [#allocation3], 4294966784 }
  0x18   :  { %1242 = dma.done.wait [#allocation6], 1056  }
  0x19   :  { %1243 = vsyncadd [#allocation6], 4294966240 }
  0x1a   :  { %1244 = dma.done.wait [#allocation9], 3584  }
  0x1b   :  { %1245 = vsyncadd [#allocation9], 4294963712 }
  0x1c   :  { %1246 = dma.done.wait [#allocation12], 2048  }
  0x1d   :  { %1247 = vsyncadd [#allocation12], 4294965248  ;;  %v206_v0 = vld [vmem:[#allocation8 + $0x48] sm:$0xff]  ;;  %v203_v2 = vld [vmem:[#allocation8 + $0x30] sm:$0xff]  ;;  %vm153_vm0 = vcmask 261120   ;;  %v1262_v47 = vmov 0  }
  0x1e   :  { %v145_v1 = vld [vmem:[#allocation5 + $0x30] sm:$0xff]  ;;  %233 = vmatpush.msra.mxu2 %v206_v0  ;;  %v143_v3 = vld [vmem:[#allocation5 + $0x20] sm:$0xff]  ;;  %v1358_v12 = vld [vmem:[%s1650_s5 + $0x78] sm:$0xff]  ;;  %990 = vset.pattern.permute.xlu0 %v1262_v47  ;;  %vm388_vm1 = vcmask 130112   ;;  %vm393_vm2 = vcmask 1041409   ;;  %vm396_vm3 = vcmask 123904  }
  0x1f   :  { %169 = vmatpush.msra.mxu1 %v145_v1  ;;  %v200_v4 = vld [vmem:[#allocation8 + $0x18] sm:$0xff]  ;;  %v141_v5 = vld [vmem:[#allocation5 + $0x10] sm:$0xff]  ;;  %v197_v6 = vld [vmem:[#allocation8] sm:$0xff]  ;;  %991 = vset.pattern.permute.xlu1 %v1262_v47  ;;  %vm479_vm8 = vcmask 130048   ;;  %s1263_s17 = smov 127   ;;  %s1264_s30 = smov [#allocation13]  }
  0x20   :  { %234 = vmatpush.msra.mxu2 %v203_v2  ;;  %v1348_v7 = vld [vmem:[#allocation2] sm:$0xff]  ;;  %v207_v9 = vld [vmem:[#allocation8 + $0x50] sm:$0xff]  ;;  %v1368_v14 = vld [vmem:[%s1650_s5 + $0x68] sm:$0xff]  ;;  %992 = vset.pattern.permute.xlu2 %v1262_v47  ;;  %s942_s13 = sshll.u32 %s1264_s30, 4  ;;  %s944_s3 = sshll.u32 %s1657_s12, 4  ;;  %s943_s13 = int_to_ptr.vmem [resolvable:$true] %s942_s13  ;;  %s945_s3 = int_to_ptr.hbm [resolvable:$true] %s944_s3 }
  0x21   :  { %170 = vmatpush.msra.mxu1 %v143_v3  ;;  %v139_v8 = vld [vmem:[#allocation5] sm:$0xff]  ;;  %262 = vmatpush.msra.mxu3 %v207_v9  ;;  %v1363_v13 = vld [vmem:[%s1650_s5 + $0x70] sm:$0xff]  ;;  %v1382_v18 = vld [vmem:[%s1650_s5 + $0x58] sm:$0xff] }
  0x22   :  { %235 = vmatpush.msra.mxu2 %v200_v4  ;;  %v1353_v10 = vld [vmem:[%s1646_s1] sm:$0x3]  ;;  %v993_v16 = vpack.i.bf16 %v1363_v13, %v1358_v12  ;;  %v1387_v19 = vld [vmem:[%s1650_s5 + $0x50] sm:$0xff]  ;;  %v201_v20 = vld [vmem:[#allocation8 + $0x20] sm:$0xff] }
  0x23   :  { %171 = vmatpush.msra.mxu1 %v141_v5  ;;  %v204_v11 = vld [vmem:[#allocation8 + $0x38] sm:$0xff]  ;;  %v1003_v21 = vpack.i.bf16 %v1387_v19, %v1382_v18  ;;  %v1398_v22 = vld [vmem:[%s1650_s5 + $0x48] sm:$0xff]  ;;  %v1416_v27 = vld [vmem:[#allocation2 + $0x10] sm:$0xff]  ;;  %v383_v5 = vlaneseq }
  0x24   :  { %v1373_v15 = vld [vmem:[%s1650_s5 + $0x60] sm:$0xff]  ;;  %236 = vmatpush.msra.mxu2 %v197_v6  ;;  %263 = vmatpush.msra.mxu3 %v204_v11  ;;  %v198_v25 = vld [vmem:[#allocation8 + $0x8] sm:$0xff]  ;;  %v1429_v28 = vld [vmem:[%s1650_s5 + $0x38] sm:$0xff] }
  0x25   :  { %172 = vmatpush.msra.mxu1 %v139_v8  ;;  %v998_v17 = vpack.i.bf16 %v1373_v15, %v1368_v14  ;;  %959 = vmatmul.msk.f32.vlgmr.msra.gmra.mxu2 %vm153_vm0, %v1348_v7  ;;  %v1403_v23 = vld [vmem:[%s1650_s5 + $0x40] sm:$0xff]  ;;  %v1407_v26 = vld [vmem:[#allocation2 + $0x8] sm:$0xff]  ;;  %v1431_v29 = vld [vmem:[#allocation2 + $0x18] sm:$0xff]  ;;  %v1492_v8 = vand.u32 127, %v383_v5 }
  0x26   :  { %957 = vmatmul.msk.f32.vlgmr.msra.gmra.mxu1 %vm153_vm0, %v1353_v10  ;;  %v1008_v24 = vpack.i.bf16 %v1403_v23, %v1398_v22  ;;  %264 = vmatpush.msra.mxu3 %v201_v20  ;;  %v1444_v30 = vld [vmem:[%s1650_s5 + $0x30] sm:$0xff]  ;;  %v1450_v31 = vld [vmem:[%s1650_s5 + $0x28] sm:$0xff]  ;;  %v1456_v32 = vld [vmem:[%s1650_s5 + $0x20] sm:$0xff] }
  0x27   :  { %v1462_v33 = vld [vmem:[%s1650_s5 + $0x18] sm:$0xff]  ;;  %v1018_v34 = vpack.i.bf16 %v1456_v32, %v1450_v31  ;;  %v1470_v35 = vld [vmem:[%s1650_s5 + $0x10] sm:$0xff]  ;;  %v1477_v37 = vld [vmem:[%s1650_s5 + $0x8] sm:$0xff]  ;;  %v1495_v9 = vadd.s32 4294967288, %v1492_v8 }
  0x28   :  { %265 = vmatpush.msra.mxu3 %v198_v25  ;;  %v1023_v36 = vpack.i.bf16 %v1470_v35, %v1462_v33  ;;  %v1484_v38 = vld [vmem:[%s1650_s5] sm:$0xff] }
  0x29   :  { %963 = vmatmul.msk.f32.vlgmr.msra.gmra.mxu3 %vm153_vm0, %v1348_v7  ;;  %v1028_v39 = vpack.i.bf16 %v1484_v38, %v1477_v37  ;;  %v1489_v40 = vld [vmem:[#allocation7] sm:$0x3] }
  0x2a   :  { %338 = vmatpush.msrb.mxu3 %v1358_v12  ;;  %v149_v41 = vperm.slane %v1489_v40, 0  ;;  %v1013_v12 = vpack.i.bf16 %v1444_v30, %v1429_v28 }
  0x2c   :  { %339 = vmatpush.msrb.mxu3 %v1363_v13  ;;  %v546_v13 = vld [vmem:[%s1651_s6 + $0x28] sm:$0xff] }
  0x2d   :  { %960 = vmatmul.msk.f32.gmra.mxu2 %vm153_vm0, %v1407_v26 }
  0x2e   :  { %340 = vmatpush.msrb.mxu3 %v1368_v14  ;;  %v545_v14 = vld [vmem:[%s1651_s6 + $0x20] sm:$0xff] }
  0x30   :  { %341 = vmatpush.msrb.mxu3 %v1373_v15  ;;  %v544_v15 = vld [vmem:[%s1651_s6 + $0x18] sm:$0xff] }
  0x31   :  { %964 = vmatmul.msk.f32.gmra.mxu3 %vm153_vm0, %v1407_v26 }
  0x32   :  { %342 = vmatpush.msrb.mxu3 %v1382_v18  ;;  %v541_v18 = vld [vmem:[%s1651_s6] sm:$0xff] }
  0x34   :  { %343 = vmatpush.msrb.mxu3 %v1387_v19 }
  0x35   :  { %961 = vmatmul.msk.f32.gmra.mxu2 %vm153_vm0, %v1416_v27 }
  0x36   :  { %344 = vmatpush.msrb.mxu3 %v1398_v22 }
  0x38   :  { %345 = vmatpush.msrb.mxu3 %v1403_v23 }
  0x39   :  { %965 = vmatmul.msk.f32.gmra.mxu3 %vm153_vm0, %v1416_v27 }
  0x3a   :  { %346 = vmatpush.msrb.mxu3 %v1429_v28 }
  0x3c   :  { %347 = vmatpush.msrb.mxu3 %v1444_v30 }
  0x3d   :  { %962 = vmatmul.msk.f32.gmra.mxu2 %vm153_vm0, %v1431_v29 }
  0x3e   :  { %348 = vmatpush.msrb.mxu3 %v1450_v31 }
  0x40   :  { %349 = vmatpush.msrb.mxu3 %v1456_v32 }
  0x41   :  { %966 = vmatmul.msk.f32.gmra.mxu3 %vm153_vm0, %v1431_v29 }
  0x42   :  { %350 = vmatpush.msrb.mxu3 %v1462_v33 }
  0x44   :  { %351 = vmatpush.msrb.mxu3 %v1470_v35 }
  0x46   :  { %352 = vmatpush.msrb.mxu3 %v1477_v37 }
  0x48   :  { %353 = vmatpush.msrb.mxu3 %v1484_v38  ;;  %v150_v38 = vperm.slane %v1489_v40, 1 }
  0xa3   :  { %v174_v42 = vpop.f32.mrf.mxu1 }
  0xa4   :  { %v175_v43 = vadd.f32 %v174_v42, %v149_v41 }
  0xa6   :  { %v326_v44 = vperm.slane %v175_v43, 0  ;;  %v325_v52 = vrot.slane %v175_v43, 1 }
  0xa8   :  { %v238_v45 = vpop.f32.mrf.mxu2  ;;  %v327_v54 = vperm.slane %v325_v52, 0 }
  0xa9   :  { %v330_v46 = vadd.f32 %v326_v44, %v238_v45 }
  0xab   :  { %1036 = vtanh.f32 %v330_v46 }
  0xac   :  { %v267_v48 = vpop.f32.mrf.mxu3 }
  0xb0   :  { %v241_v49 = vpop.f32.mrf.mxu2 }
  0xb1   :  { %v1037_v50 = vpop.eup %1036  ;;  %v331_v51 = vadd.f32 %v326_v44, %v241_v49 }
  0xb2   :  { %354 = vmatmul.f32.vlgmr.msrb.gmra.mxu3 %v1037_v50 }
  0xb3   :  { %1038 = vtanh.f32 %v331_v51 }
  0xb4   :  { %v270_v53 = vpop.f32.mrf.mxu3 }
  0xb5   :  { %496 = vmatpush.msrb.mxu2 %v270_v53 }
  0xb7   :  { %497 = vmatpush.msrb.mxu2 %v267_v48 }
  0xb8   :  { %v244_v55 = vpop.f32.mrf.mxu2 }
  0xb9   :  { %v1039_v56 = vpop.eup %1038  ;;  %v332_v57 = vadd.f32 %v327_v54, %v244_v55 }
  0xba   :  { %357 = vmatmul.f32.gmra.mxu3 %v1039_v56 }
  0xbb   :  { %1040 = vtanh.f32 %v332_v57 }
  0xbc   :  { %v273_v58 = vpop.f32.mrf.mxu3 }
  0xc0   :  { %v247_v59 = vpop.f32.mrf.mxu2 }
  0xc1   :  { %v1041_v60 = vpop.eup %1040  ;;  %v333_v61 = vadd.f32 %v327_v54, %v247_v59 }
  0xc2   :  { %360 = vmatmul.f32.gmra.mxu3 %v1041_v60 }
  0xc3   :  { %1042 = vtanh.f32 %v333_v61 }
  0xc4   :  { %v276_v62 = vpop.f32.mrf.mxu3 }
  0xc5   :  { %529 = vmatpush.msra.mxu3 %v276_v62 }
  0xc7   :  { %530 = vmatpush.msra.mxu3 %v273_v58 }
  0xc9   :  { %v1043_v63 = vpop.eup %1042 }
  0xca   :  { %363 = vmatmul.f32.gmra.mxu3 %v1043_v63 }
 0x135   :  { %v355_v0 = vpop.f32.mrf.mxu3 }
 0x136   :  { %372 = vperm.xlu0 %990, %v355_v0  }
 0x13d   :  { %v358_v1 = vpop.f32.mrf.mxu3 }
 0x13e   :  { %375 = vperm.xlu0 %990, %v358_v1  }
 0x145   :  { %v361_v2 = vpop.f32.mrf.mxu3 }
 0x146   :  { %378 = vperm.xlu1 %991, %v361_v2  }
 0x14d   :  { %v364_v3 = vpop.f32.mrf.mxu3 }
 0x14e   :  { %381 = vperm.xlu1 %991, %v364_v3  }
 0x1a8   :  { %v373_v4 = vpop.permute.xlu0 %372 }
 0x1a9   :  { %v385_v41 = vperm.slane %v373_v4, %v1492_v8 }
 0x1b0   :  { %v376_v11 = vpop.permute.xlu0 %375 }
 0x1b1   :  { %v387_v20 = vperm.slane %v376_v11, %v1495_v9 }
 0x1b3   :  { %v389_v44 = vsel %vm388_vm1, %v387_v20, %v385_v41 }
 0x1b8   :  { %v379_v6 = vpop.permute.xlu1 %378 }
 0x1b9   :  { %v390_v42 = vperm.slane %v379_v6, %v1492_v8 }
 0x1c0   :  { %v382_v25 = vpop.permute.xlu1 %381 }
 0x1c1   :  { %v391_v43 = vperm.slane %v382_v25, %v1495_v9 }
 0x1c3   :  { %v392_v45 = vsel %vm388_vm1, %v391_v43, %v390_v42 }
 0x1c4   :  { %v394_v46 = vsel %vm393_vm2, %v392_v45, %v389_v44 }
 0x1c5   :  { %v397_v47 = vsel %vm396_vm3, %v394_v46, -inf }
 0x1c6   :  { %398 = vmax.xlane.f32.xlu2 %v397_v47 }
 0x239   :  { %v399_v48 = vpop.xlane.xlu2 %398 }
 0x23a   :  { %v401_v49 = vperm.slane %v399_v48, 0  ;;  %v402_v50 = vperm.slane %v399_v48, 1 }
 0x23c   :  { %v405_v51 = vsub.f32 %v355_v0, %v401_v49  ;;  %v406_v52 = vsub.f32 %v358_v1, %v401_v49  ;;  %v407_v53 = vsub.f32 %v361_v2, %v402_v50  ;;  %v408_v57 = vsub.f32 %v364_v3, %v402_v50 }
 0x23e   :  { %v409_v54 = vmul.f32 1.442695, %v405_v51  ;;  %v411_v55 = vmul.f32 1.442695, %v406_v52  ;;  %v413_v56 = vmul.f32 1.442695, %v407_v53 }
 0x23f   :  { %v415_v58 = vmul.f32 1.442695, %v408_v57 }
 0x240   :  { %1044 = vpow2.f32 %v409_v54 }
 0x241   :  { %1046 = vpow2.f32 %v411_v55 }
 0x242   :  { %1048 = vpow2.f32 %v413_v56 }
 0x243   :  { %1050 = vpow2.f32 %v415_v58 }
 0x246   :  { %v1045_v59 = vpop.eup %1044 }
 0x247   :  { %v1047_v60 = vpop.eup %1046  ;;  %422 = vperm.xlu2 %992, %v1045_v59  }
 0x248   :  { %v1049_v61 = vpop.eup %1048  ;;  %425 = vperm.xlu0 %990, %v1047_v60  }
 0x249   :  { %428 = vperm.xlu1 %991, %v1049_v61   ;;  %v1051_v62 = vpop.eup %1050 }
 0x250   :  { %431 = vperm.xlu0 %990, %v1051_v62  }
 0x2a1   :  { %v423_v0 = vpop.permute.xlu2 %422 }
 0x2a2   :  { %v433_v3 = vperm.slane %v423_v0, %v1492_v8  ;;  %v144_v0 = vld [vmem:[#allocation5 + $0x28] sm:$0xff] }
 0x2ba   :  { %v426_v63 = vpop.permute.xlu0 %425 }
 0x2bb   :  { %v429_v1 = vpop.permute.xlu1 %428  ;;  %v434_v2 = vperm.slane %v426_v63, %v1495_v9  ;;  %v146_v63 = vld [vmem:[#allocation5 + $0x38] sm:$0xff] }
 0x2bc   :  { %v436_v5 = vperm.slane %v429_v1, %v1492_v8  ;;  %189 = vmatpush.msrb.mxu1 %v146_v63  ;;  %v142_v1 = vld [vmem:[#allocation5 + $0x18] sm:$0xff] }
 0x2bd   :  { %v435_v11 = vsel %vm388_vm1, %v434_v2, %v433_v3  ;;  %v208_v2 = vld [vmem:[#allocation8 + $0x58] sm:$0xff]  ;;  %v205_v3 = vld [vmem:[#allocation8 + $0x40] sm:$0xff] }
 0x2be   :  { %190 = vmatpush.msrb.mxu1 %v144_v0  ;;  %291 = vmatpush.msra.mxu0 %v208_v2 }
 0x2c0   :  { %191 = vmatpush.msrb.mxu1 %v142_v1  ;;  %292 = vmatpush.msra.mxu0 %v205_v3 }
 0x2c2   :  { %v432_v4 = vpop.permute.xlu0 %431 }
 0x2c3   :  { %v437_v6 = vperm.slane %v432_v4, %v1495_v9  ;;  %v140_v4 = vld [vmem:[#allocation5 + $0x8] sm:$0xff] }
 0x2c4   :  { %192 = vmatpush.msrb.mxu1 %v140_v4 }
 0x2c5   :  { %v438_v20 = vsel %vm388_vm1, %v437_v6, %v436_v5  ;;  %v202_v5 = vld [vmem:[#allocation8 + $0x28] sm:$0xff]  ;;  %958 = vmatmul.msk.f32.vlgmr.msrb.gmra.mxu1 %vm153_vm0, %v1353_v10  ;;  %v553_v10 = vld [vmem:[%s1651_s6 + $0x60] sm:$0xff]  ;;  %v552_v6 = vld [vmem:[%s1651_s6 + $0x58] sm:$0xff] }
 0x2c6   :  { %v439_v25 = vsel %vm393_vm2, %v438_v20, %v435_v11  ;;  %293 = vmatpush.msra.mxu0 %v202_v5  ;;  %v551_v11 = vld [vmem:[%s1651_s6 + $0x50] sm:$0xff]  ;;  %v550_v20 = vld [vmem:[%s1651_s6 + $0x48] sm:$0xff] }
 0x2c7   :  { %v441_v41 = vsel %vm396_vm3, %v439_v25, 0.0 }
 0x2c8   :  { %442 = vadd.xlane.f32.xlu1 %v441_v41  ;;  %v549_v41 = vld [vmem:[%s1651_s6 + $0x40] sm:$0xff] }
 0x2e1   :  { %1024 = vrot.lane.b32.xlu1 %v1023_v36, %s1263_s17 }
 0x33b   :  { %v443_v42 = vpop.xlane.xlu1 %442 }
 0x33c   :  { %1052 = vrcp.f32 %v443_v42  ;;  %v455_v46 = vand.u32 2147483648, %v443_v42  ;;  %v453_v48 = vand.u32 2147483647, %v443_v42  ;;  %vm449_vm5 = vweird.f32 %v443_v42 }
 0x33e   :  { %v456_v50 = vor.u32 1.1754944e-38, %v455_v46  ;;  %vm454_vm7 = vcmp.eq.f32.partialorder %v453_v48, 8.507059e+37 }
 0x342   :  { %v1053_v43 = vpop.eup %1052 }
 0x343   :  { %v445_v44 = vmul.f32 %v1053_v43, %v443_v42  ;;  %vm450_vm4 = vweird.f32 %v1053_v43 }
 0x344   :  { %vm451_vm6 = vmor %vm449_vm5, %vm450_vm4 }
 0x345   :  { %v446_v45 = vsub.f32 1.0, %v445_v44 }
 0x347   :  { %v447_v47 = vmul.f32 %v1053_v43, %v446_v45  ;;  %v547_v45 = vld [vmem:[%s1651_s6 + $0x30] sm:$0xff] }
 0x349   :  { %v448_v49 = vadd.f32 %v1053_v43, %v447_v47 }
 0x34b   :  { %v452_v51 = vsel %vm451_vm6, %v1053_v43, %v448_v49 }
 0x34c   :  { %v457_v52 = vsel %vm454_vm7, %v456_v50, %v452_v51 }
 0x34d   :  { %v461_v53 = vperm.slane %v457_v52, 1  ;;  %v460_v56 = vperm.slane %v457_v52, 0 }
 0x34f   :  { %v467_v54 = vmul.f32 %v1051_v62, %v461_v53  ;;  %v466_v55 = vmul.f32 %v1049_v61, %v461_v53  ;;  %v465_v57 = vmul.f32 %v1047_v60, %v460_v56  ;;  %v464_v58 = vmul.f32 %v1045_v59, %v460_v56  ;;  %v199_v61 = vld [vmem:[#allocation8 + $0x10] sm:$0xff]  ;;  %v554_v62 = vld [vmem:[%s1651_s6 + $0x68] sm:$0xff] }
 0x350   :  { %v556_v59 = vld [vmem:[%s1651_s6 + $0x78] sm:$0xff]  ;;  %294 = vmatpush.msra.mxu0 %v199_v61  ;;  %v555_v60 = vld [vmem:[%s1651_s6 + $0x70] sm:$0xff] }
 0x351   :  { %508 = vperm.xlu2 %992, %v467_v54   ;;  %505 = vperm.xlu0 %990, %v466_v55  }
 0x352   :  { %967 = vmatmul.msk.f32.vlgmr.msra.gmra.mxu0 %vm153_vm0, %v1348_v7 }
 0x353   :  { %561 = vmatpush.msrb.mxu0 %v556_v59  ;;  %v1025_v2 = vpop.permute.xlu1 %1024 }
 0x354   :  { %v1026_v4 = vunpack.i.l.bf16 %v1025_v2  ;;  %v1027_v3 = vunpack.i.h.bf16 %v1025_v2 }
 0x355   :  { %562 = vmatpush.msrb.mxu0 %v555_v60  ;;  %v1033_v60 = vld [vmem:[%s1652_s7] ss:$0 sm:$0xff] }
 0x357   :  { %563 = vmatpush.msrb.mxu0 %v554_v62 }
 0x359   :  { %474 = vperm.xlu2 %992, %v465_v57   ;;  %471 = vperm.xlu0 %990, %v464_v58  }
 0x35a   :  { %564 = vmatpush.msrb.mxu0 %v553_v10 }
 0x35b   :  { %968 = vmatmul.msk.f32.gmra.mxu0 %vm153_vm0, %v1407_v26  ;;  %v548_v26 = vld [vmem:[%s1651_s6 + $0x38] sm:$0xff] }
 0x35c   :  { %565 = vmatpush.msrb.mxu0 %v552_v6 }
 0x35e   :  { %566 = vmatpush.msrb.mxu0 %v551_v11 }
 0x360   :  { %567 = vmatpush.msrb.mxu0 %v550_v20 }
 0x361   :  { %994 = vrot.lane.b32.xlu0 %v993_v16, %s1263_s17  ;;  %999 = vrot.lane.b32.xlu2 %v998_v17, %s1263_s17  ;;  %v543_v16 = vld [vmem:[%s1651_s6 + $0x10] sm:$0xff]  ;;  %v542_v17 = vld [vmem:[%s1651_s6 + $0x8] sm:$0xff] }
 0x362   :  { %568 = vmatpush.msrb.mxu0 %v549_v41 }
 0x363   :  { %969 = vmatmul.msk.f32.gmra.mxu0 %vm153_vm0, %v1416_v27 }
 0x364   :  { %569 = vmatpush.msrb.mxu0 %v548_v26 }
 0x366   :  { %570 = vmatpush.msrb.mxu0 %v547_v45 }
 0x368   :  { %571 = vmatpush.msrb.mxu0 %v546_v13 }
 0x369   :  { %1004 = vrot.lane.b32.xlu0 %v1003_v21, %s1263_s17  ;;  %1009 = vrot.lane.b32.xlu2 %v1008_v24, %s1263_s17 }
 0x36a   :  { %572 = vmatpush.msrb.mxu0 %v545_v14 }
 0x36b   :  { %970 = vmatmul.msk.f32.gmra.mxu0 %vm153_vm0, %v1431_v29 }
 0x36c   :  { %573 = vmatpush.msrb.mxu0 %v544_v15 }
 0x36e   :  { %574 = vmatpush.msrb.mxu0 %v543_v16 }
 0x370   :  { %575 = vmatpush.msrb.mxu0 %v542_v17 }
 0x371   :  { %1014 = vrot.lane.b32.xlu0 %v1013_v12, %s1263_s17  ;;  %1019 = vrot.lane.b32.xlu2 %v1018_v34, %s1263_s17 }
 0x372   :  { %576 = vmatpush.msrb.mxu0 %v541_v18 }
 0x379   :  { %1029 = vrot.lane.b32.xlu0 %v1028_v39, %s1263_s17  ;;  %v194_v39 = vpop.f32.mrf.mxu1 }
 0x37a   :  { %v195_v56 = vadd.f32 %v194_v39, %v150_v38 }
 0x3ab   :  { %v509_v7 = vpop.permute.xlu2 %508 }
 0x3ac   :  { %v511_v42 = vperm.slane %v509_v7, %v1495_v9 }
 0x3b3   :  { %v475_v46 = vpop.permute.xlu2 %474 }
 0x3b4   :  { %v477_v48 = vperm.slane %v475_v46, %v1495_v9 }
 0x3bb   :  { %v1000_v21 = vpop.permute.xlu2 %999 }
 0x3bc   :  { %v1001_v29 = vunpack.i.l.bf16 %v1000_v21  ;;  %v1002_v30 = vunpack.i.h.bf16 %v1000_v21 }
 0x3c3   :  { %v506_v25 = vpop.permute.xlu0 %505  ;;  %v1010_v31 = vpop.permute.xlu2 %1009 }
 0x3c4   :  { %v510_v43 = vperm.slane %v506_v25, %v1492_v8  ;;  %v1011_v36 = vunpack.i.l.bf16 %v1010_v31  ;;  %v1012_v37 = vunpack.i.h.bf16 %v1010_v31 }
 0x3c6   :  { %v512_v44 = vsel %vm388_vm1, %v511_v42, %v510_v43 }
 0x3c7   :  { %972 = vmatmul.msk.f32.vlgmr.msra.gmra.mxu3 %vm479_vm8, %v512_v44 }
 0x3cb   :  { %v472_v47 = vpop.permute.xlu0 %471  ;;  %v1020_v51 = vpop.permute.xlu2 %1019 }
 0x3cc   :  { %v476_v49 = vperm.slane %v472_v47, %v1492_v8  ;;  %v1021_v58 = vunpack.i.l.bf16 %v1020_v51  ;;  %v1022_v1 = vunpack.i.h.bf16 %v1020_v51 }
 0x3ce   :  { %v478_v27 = vsel %vm388_vm1, %v477_v48, %v476_v49 }
 0x3cf   :  { %971 = vmatmul.msk.f32.vlgmr.msrb.gmra.mxu2 %vm479_vm8, %v478_v27  ;;  %v296_v19 = vpop.f32.mrf.mxu0 }
 0x3d3   :  { %v995_v23 = vpop.permute.xlu0 %994 }
 0x3d4   :  { %v997_v24 = vunpack.i.h.bf16 %v995_v23  ;;  %v996_v28 = vunpack.i.l.bf16 %v995_v23 }
 0x3d6   :  { %659 = vmatpush.msra.mxu1 %v996_v28 }
 0x3d8   :  { %v299_v22 = vpop.f32.mrf.mxu0  ;;  %660 = vmatpush.msra.mxu1 %v997_v24 }
 0x3d9   :  { %810 = vmatpush.msra.mxu2 %v299_v22 }
 0x3da   :  { %661 = vmatpush.msra.mxu1 %v1001_v29 }
 0x3db   :  { %811 = vmatpush.msra.mxu2 %v296_v19  ;;  %v1005_v33 = vpop.permute.xlu0 %1004 }
 0x3dc   :  { %v1007_v34 = vunpack.i.h.bf16 %v1005_v33  ;;  %v1006_v35 = vunpack.i.l.bf16 %v1005_v33  ;;  %662 = vmatpush.msra.mxu1 %v1002_v30 }
 0x3de   :  { %663 = vmatpush.msra.mxu1 %v1006_v35 }
 0x3e0   :  { %v302_v32 = vpop.f32.mrf.mxu0  ;;  %664 = vmatpush.msra.mxu1 %v1007_v34 }
 0x3e2   :  { %665 = vmatpush.msra.mxu1 %v1011_v36 }
 0x3e3   :  { %v1015_v53 = vpop.permute.xlu0 %1014 }
 0x3e4   :  { %v1017_v54 = vunpack.i.h.bf16 %v1015_v53  ;;  %v1016_v55 = vunpack.i.l.bf16 %v1015_v53  ;;  %666 = vmatpush.msra.mxu1 %v1012_v37 }
 0x3e6   :  { %667 = vmatpush.msra.mxu1 %v1016_v55 }
 0x3e8   :  { %v305_v52 = vpop.f32.mrf.mxu0  ;;  %668 = vmatpush.msra.mxu1 %v1017_v54 }
 0x3e9   :  { %843 = vmatpush.msrb.mxu3 %v305_v52 }
 0x3ea   :  { %669 = vmatpush.msra.mxu1 %v1021_v58 }
 0x3eb   :  { %844 = vmatpush.msrb.mxu3 %v302_v32  ;;  %v1030_v5 = vpop.permute.xlu0 %1029 }
 0x3ec   :  { %670 = vmatpush.msra.mxu1 %v1022_v1  ;;  %v1031_v61 = vunpack.i.l.bf16 %v1030_v5  ;;  %v1032_v59 = vunpack.i.h.bf16 %v1030_v5 }
 0x3ee   :  { %671 = vmatpush.msra.mxu1 %v1026_v4 }
 0x3f0   :  { %672 = vmatpush.msra.mxu1 %v1027_v3 }
 0x3f2   :  { %673 = vmatpush.msra.mxu1 %v1031_v61 }
 0x3f4   :  { %674 = vmatpush.msra.mxu1 %v1032_v59 }
 0x44a   :  { %v532_v50 = vpop.f32.mrf.mxu3 }
 0x44b   :  { %v537_v57 = vrot.slane %v532_v50, 7 }
 0x452   :  { %v499_v63 = vpop.f32.mrf.mxu2 }
 0x453   :  { %v538_v0 = vsel %vm393_vm2, %v537_v57, %v499_v63 }
 0x454   :  { %v1604_v40 = vadd.f32 %v538_v0, %v195_v56 }
 0x456   :  { %577 = vmatmul.f32.vlgmr.msrb.gmra.mxu0 %v1604_v40 }
 0x4d3   :  { %v578_v62 = vpop.f32.mrf.mxu0 }
 0x4d4   :  { %v579_v10 = vadd.f32 %v1033_v60, %v578_v62 }
 0x4d6   :  { %v583_v6 = vperm.slane %v579_v10, 0  ;;  %v582_v11 = vrot.slane %v579_v10, 1 }
 0x4d8   :  { %v587_v7 = vadd.f32 %v583_v6, %v296_v19  ;;  %v588_v20 = vadd.f32 %v583_v6, %v299_v22  ;;  %v584_v41 = vperm.slane %v582_v11, 0 }
 0x4da   :  { %1054 = vtanh.f32 %v587_v7  ;;  %v589_v42 = vadd.f32 %v584_v41, %v302_v32  ;;  %v590_v26 = vadd.f32 %v584_v41, %v305_v52 }
 0x4db   :  { %1056 = vtanh.f32 %v588_v20 }
 0x4dc   :  { %1058 = vtanh.f32 %v589_v42 }
 0x4dd   :  { %1060 = vtanh.f32 %v590_v26 }
 0x4e0   :  { %v1055_v25 = vpop.eup %1054 }
 0x4e1   :  { %675 = vmatmul.f32.vlgmr.msra.gmra.mxu1 %v1055_v25  ;;  %v1057_v43 = vpop.eup %1056 }
 0x4e2   :  { %v1059_v44 = vpop.eup %1058 }
 0x4e3   :  { %v1061_v45 = vpop.eup %1060 }
 0x4e9   :  { %678 = vmatmul.f32.gmra.mxu1 %v1057_v43 }
 0x4f1   :  { %681 = vmatmul.f32.gmra.mxu1 %v1059_v44 }
 0x4f9   :  { %684 = vmatmul.f32.gmra.mxu1 %v1061_v45  ;;  %v870_v45 = vld [vmem:[#allocation10 + $0x78] sm:$0xff] }
 0x4fa   :  { %875 = vmatpush.msra.mxu0 %v870_v45 }
 0x55e   :  { %v676_v46 = vpop.f32.mrf.mxu1 }
 0x55f   :  { %693 = vperm.xlu2 %992, %v676_v46  }
 0x566   :  { %v679_v47 = vpop.f32.mrf.mxu1 }
 0x567   :  { %696 = vperm.xlu0 %990, %v679_v47  }
 0x56e   :  { %v682_v48 = vpop.f32.mrf.mxu1 }
 0x56f   :  { %699 = vperm.xlu2 %992, %v682_v48  }
 0x576   :  { %v685_v49 = vpop.f32.mrf.mxu1 }
 0x577   :  { %702 = vperm.xlu0 %990, %v685_v49  }
 0x5b9   :  { %v694_v27 = vpop.permute.xlu2 %693 }
 0x5ba   :  { %v704_v16 = vperm.slane %v694_v27, %v1492_v8  ;;  %v865_v27 = vld [vmem:[#allocation10 + $0x50] sm:$0xff] }
 0x5c9   :  { %v700_v13 = vpop.permute.xlu2 %699 }
 0x5ca   :  { %v707_v17 = vperm.slane %v700_v13, %v1492_v8 }
 0x5d9   :  { %v697_v12 = vpop.permute.xlu0 %696 }
 0x5da   :  { %v705_v14 = vperm.slane %v697_v12, %v1495_v9  ;;  %v864_v12 = vld [vmem:[#allocation10 + $0x48] sm:$0xff] }
 0x5dc   :  { %v706_v19 = vsel %vm388_vm1, %v705_v14, %v704_v16  ;;  %v863_v14 = vld [vmem:[#allocation10 + $0x40] sm:$0xff]  ;;  %v861_v16 = vld [vmem:[#allocation10 + $0x30] sm:$0xff] }
 0x5e9   :  { %v703_v15 = vpop.permute.xlu0 %702 }
 0x5ea   :  { %v708_v18 = vperm.slane %v703_v15, %v1495_v9  ;;  %v862_v15 = vld [vmem:[#allocation10 + $0x38] sm:$0xff] }
 0x5ec   :  { %v709_v21 = vsel %vm388_vm1, %v708_v18, %v707_v17 }
 0x5ed   :  { %v710_v22 = vsel %vm393_vm2, %v709_v21, %v706_v19 }
 0x5ee   :  { %v712_v23 = vsel %vm396_vm3, %v710_v22, -inf }
 0x5ef   :  { %713 = vmax.xlane.f32.xlu2 %v712_v23 }
 0x662   :  { %v714_v24 = vpop.xlane.xlu2 %713 }
 0x663   :  { %v716_v28 = vperm.slane %v714_v24, 0  ;;  %v717_v29 = vperm.slane %v714_v24, 1 }
 0x665   :  { %v720_v30 = vsub.f32 %v676_v46, %v716_v28  ;;  %v721_v31 = vsub.f32 %v679_v47, %v716_v28  ;;  %v722_v34 = vsub.f32 %v682_v48, %v717_v29  ;;  %v723_v35 = vsub.f32 %v685_v49, %v717_v29  ;;  %v869_v46 = vld [vmem:[#allocation10 + $0x70] sm:$0xff]  ;;  %v868_v47 = vld [vmem:[#allocation10 + $0x68] sm:$0xff]  ;;  %v867_v48 = vld [vmem:[#allocation10 + $0x60] sm:$0xff] }
 0x666   :  { %876 = vmatpush.msra.mxu0 %v869_v46  ;;  %v866_v49 = vld [vmem:[#allocation10 + $0x58] sm:$0xff] }
 0x667   :  { %v724_v32 = vmul.f32 1.442695, %v720_v30  ;;  %v726_v33 = vmul.f32 1.442695, %v721_v31  ;;  %v728_v36 = vmul.f32 1.442695, %v722_v34 }
 0x668   :  { %v730_v37 = vmul.f32 1.442695, %v723_v35  ;;  %877 = vmatpush.msra.mxu0 %v868_v47  ;;  %v860_v30 = vld [vmem:[#allocation10 + $0x28] sm:$0xff]  ;;  %v859_v31 = vld [vmem:[#allocation10 + $0x20] sm:$0xff] }
 0x669   :  { %1062 = vpow2.f32 %v724_v32  ;;  %v858_v32 = vld [vmem:[#allocation10 + $0x18] sm:$0xff]  ;;  %v856_v34 = vld [vmem:[#allocation10 + $0x8] sm:$0xff]  ;;  %v855_v35 = vld [vmem:[#allocation10] sm:$0xff] }
 0x66a   :  { %1064 = vpow2.f32 %v726_v33  ;;  %878 = vmatpush.msra.mxu0 %v867_v48  ;;  %v857_v33 = vld [vmem:[#allocation10 + $0x10] sm:$0xff] }
 0x66b   :  { %1066 = vpow2.f32 %v728_v36  ;;  %v911_v36 = vld [vmem:[#allocation11 + $0x78] sm:$0xff] }
 0x66c   :  { %1068 = vpow2.f32 %v730_v37  ;;  %879 = vmatpush.msra.mxu0 %v866_v49  ;;  %v910_v37 = vld [vmem:[#allocation11 + $0x70] sm:$0xff]  ;;  %916 = vmatpush.msrb.mxu2 %v911_v36 }
 0x66e   :  { %880 = vmatpush.msra.mxu0 %v865_v27  ;;  %917 = vmatpush.msrb.mxu2 %v910_v37 }
 0x66f   :  { %v1063_v38 = vpop.eup %1062 }
 0x670   :  { %v1065_v39 = vpop.eup %1064  ;;  %737 = vperm.xlu1 %991, %v1063_v38   ;;  %881 = vmatpush.msra.mxu0 %v864_v12 }
 0x671   :  { %740 = vperm.xlu0 %990, %v1065_v39   ;;  %v1067_v50 = vpop.eup %1066 }
 0x672   :  { %v1069_v51 = vpop.eup %1068  ;;  %882 = vmatpush.msra.mxu0 %v863_v14 }
 0x674   :  { %883 = vmatpush.msra.mxu0 %v862_v15 }
 0x676   :  { %884 = vmatpush.msra.mxu0 %v861_v16 }
 0x678   :  { %743 = vperm.xlu1 %991, %v1067_v50   ;;  %885 = vmatpush.msra.mxu0 %v860_v30 }
 0x679   :  { %746 = vperm.xlu0 %990, %v1069_v51  }
 0x67a   :  { %886 = vmatpush.msra.mxu0 %v859_v31 }
 0x67c   :  { %887 = vmatpush.msra.mxu0 %v858_v32 }
 0x67e   :  { %888 = vmatpush.msra.mxu0 %v857_v33 }
 0x680   :  { %889 = vmatpush.msra.mxu0 %v856_v34 }
 0x682   :  { %890 = vmatpush.msra.mxu0 %v855_v35 }
 0x6e2   :  { %v738_v52 = vpop.permute.xlu1 %737 }
 0x6e3   :  { %v741_v53 = vpop.permute.xlu0 %740  ;;  %v748_v55 = vperm.slane %v738_v52, %v1492_v8  ;;  %v903_v52 = vld [vmem:[#allocation11 + $0x38] sm:$0xff] }
 0x6e4   :  { %v749_v54 = vperm.slane %v741_v53, %v1495_v9  ;;  %v902_v53 = vld [vmem:[#allocation11 + $0x30] sm:$0xff] }
 0x6e6   :  { %v750_v0 = vsel %vm388_vm1, %v749_v54, %v748_v55  ;;  %v901_v54 = vld [vmem:[#allocation11 + $0x28] sm:$0xff]  ;;  %v900_v55 = vld [vmem:[#allocation11 + $0x20] sm:$0xff] }
 0x6ea   :  { %v744_v56 = vpop.permute.xlu1 %743 }
 0x6eb   :  { %v747_v57 = vpop.permute.xlu0 %746  ;;  %v751_v58 = vperm.slane %v744_v56, %v1492_v8  ;;  %v899_v56 = vld [vmem:[#allocation11 + $0x18] sm:$0xff] }
 0x6ec   :  { %v752_v63 = vperm.slane %v747_v57, %v1495_v9 }
 0x6ee   :  { %v753_v1 = vsel %vm388_vm1, %v752_v63, %v751_v58 }
 0x6ef   :  { %v754_v2 = vsel %vm393_vm2, %v753_v1, %v750_v0 }
 0x6f0   :  { %v756_v4 = vsel %vm396_vm3, %v754_v2, 0.0  ;;  %v898_v2 = vld [vmem:[#allocation11 + $0x10] sm:$0xff] }
 0x6f1   :  { %757 = vadd.xlane.f32.xlu1 %v756_v4  ;;  %v897_v4 = vld [vmem:[#allocation11 + $0x8] sm:$0xff] }
 0x764   :  { %v758_v3 = vpop.xlane.xlu1 %757 }
 0x765   :  { %1070 = vrcp.f32 %v758_v3  ;;  %v770_v60 = vand.u32 2147483648, %v758_v3  ;;  %v768_v10 = vand.u32 2147483647, %v758_v3  ;;  %vm764_vm10 = vweird.f32 %v758_v3 }
 0x767   :  { %v771_v7 = vor.u32 1.1754944e-38, %v770_v60  ;;  %vm769_vm12 = vcmp.eq.f32.partialorder %v768_v10, 8.507059e+37 }
 0x76b   :  { %v1071_v5 = vpop.eup %1070 }
 0x76c   :  { %v760_v61 = vmul.f32 %v1071_v5, %v758_v3  ;;  %vm765_vm9 = vweird.f32 %v1071_v5  ;;  %v896_v3 = vld [vmem:[#allocation11] sm:$0xff] }
 0x76d   :  { %vm766_vm11 = vmor %vm764_vm10, %vm765_vm9 }
 0x76e   :  { %v761_v59 = vsub.f32 1.0, %v760_v61 }
 0x770   :  { %v762_v62 = vmul.f32 %v1071_v5, %v761_v59 }
 0x772   :  { %v763_v6 = vadd.f32 %v1071_v5, %v762_v62  ;;  %v1035_v62 = vld [vmem:[%s1656_s11] ss:$0 sm:$0xff] }
 0x774   :  { %v767_v11 = vsel %vm766_vm11, %v1071_v5, %v763_v6  ;;  %v1034_v5 = vld [vmem:[%s1654_s9] ss:$0 sm:$0xff] }
 0x775   :  { %v772_v20 = vsel %vm769_vm12, %v771_v7, %v767_v11 }
 0x776   :  { %v776_v25 = vperm.slane %v772_v20, 1  ;;  %v775_v41 = vperm.slane %v772_v20, 0 }
 0x778   :  { %v781_v42 = vmul.f32 %v1067_v50, %v776_v25  ;;  %v780_v43 = vmul.f32 %v1065_v39, %v775_v41  ;;  %v782_v26 = vmul.f32 %v1069_v51, %v776_v25  ;;  %v779_v44 = vmul.f32 %v1063_v38, %v775_v41  ;;  %v907_v38 = vld [vmem:[#allocation11 + $0x58] sm:$0xff]  ;;  %v906_v39 = vld [vmem:[#allocation11 + $0x50] sm:$0xff]  ;;  %v905_v50 = vld [vmem:[#allocation11 + $0x48] sm:$0xff] }
 0x779   :  { %v904_v51 = vld [vmem:[#allocation11 + $0x40] sm:$0xff] }
 0x77a   :  { %819 = vperm.xlu0 %990, %v781_v42   ;;  %789 = vperm.xlu2 %992, %v780_v43  }
 0x782   :  { %822 = vperm.xlu0 %990, %v782_v26  }
 0x78a   :  { %786 = vperm.xlu0 %990, %v779_v44  }
 0x7d4   :  { %v790_v22 = vpop.permute.xlu2 %789 }
 0x7d5   :  { %v792_v24 = vperm.slane %v790_v22, %v1495_v9 }
 0x7ec   :  { %v820_v13 = vpop.permute.xlu0 %819 }
 0x7ed   :  { %v824_v18 = vperm.slane %v820_v13, %v1492_v8 }
 0x7f4   :  { %v823_v17 = vpop.permute.xlu0 %822 }
 0x7f5   :  { %v825_v19 = vperm.slane %v823_v17, %v1495_v9  ;;  %v908_v9 = vld [vmem:[#allocation11 + $0x60] sm:$0xff] }
 0x7f7   :  { %v826_v21 = vsel %vm388_vm1, %v825_v19, %v824_v18 }
 0x7f8   :  { %974 = vmatmul.msk.f32.vlgmr.msrb.gmra.mxu3 %vm479_vm8, %v826_v21 }
 0x7fc   :  { %v787_v23 = vpop.permute.xlu0 %786 }
 0x7fd   :  { %v791_v28 = vperm.slane %v787_v23, %v1492_v8  ;;  %v909_v8 = vld [vmem:[#allocation11 + $0x68] sm:$0xff] }
 0x7fe   :  { %918 = vmatpush.msrb.mxu2 %v909_v8 }
 0x7ff   :  { %v793_v29 = vsel %vm388_vm1, %v792_v24, %v791_v28 }
 0x800   :  { %973 = vmatmul.msk.f32.vlgmr.msra.gmra.mxu2 %vm479_vm8, %v793_v29 }
 0x801   :  { %919 = vmatpush.msrb.mxu2 %v908_v9 }
 0x803   :  { %920 = vmatpush.msrb.mxu2 %v907_v38 }
 0x805   :  { %921 = vmatpush.msrb.mxu2 %v906_v39 }
 0x807   :  { %922 = vmatpush.msrb.mxu2 %v905_v50 }
 0x809   :  { %923 = vmatpush.msrb.mxu2 %v904_v51 }
 0x80b   :  { %924 = vmatpush.msrb.mxu2 %v903_v52 }
 0x80d   :  { %925 = vmatpush.msrb.mxu2 %v902_v53 }
 0x80f   :  { %926 = vmatpush.msrb.mxu2 %v901_v54 }
 0x811   :  { %927 = vmatpush.msrb.mxu2 %v900_v55 }
 0x813   :  { %928 = vmatpush.msrb.mxu2 %v899_v56 }
 0x815   :  { %929 = vmatpush.msrb.mxu2 %v898_v2 }
 0x817   :  { %930 = vmatpush.msrb.mxu2 %v897_v4 }
 0x819   :  { %931 = vmatpush.msrb.mxu2 %v896_v3 }
 0x87b   :  { %v846_v57 = vpop.f32.mrf.mxu3 }
 0x87c   :  { %v851_v58 = vrot.slane %v846_v57, 7 }
 0x883   :  { %v813_v63 = vpop.f32.mrf.mxu2 }
 0x884   :  { %v852_v0 = vsel %vm393_vm2, %v851_v58, %v813_v63 }
 0x885   :  { %v854_v1 = vadd.f32 %v852_v0, %v1604_v40 }
 0x887   :  { %891 = vmatmul.f32.vlgmr.msra.gmra.mxu0 %v854_v1 }
 0x904   :  { %v892_v61 = vpop.f32.mrf.mxu0 }
 0x905   :  { %v893_v59 = vadd.f32 %v1034_v5, %v892_v61 }
 0x907   :  { %v895_v60 = vmax.f32 %v893_v59, 0.0 }
 0x909   :  { %932 = vmatmul.f32.vlgmr.msrb.gmra.mxu2 %v895_v60 }
 0x98c   :  { %v933_v40 = vpop.f32.mrf.mxu2 }
 0x98d   :  { %v934_v10 = vadd.f32 %v1035_v62, %v933_v40 }
 0x98f   :  { %936 = vst [vmem:[#allocation13] sm:$0x3] %v934_v10 }
 0x990   :  { %947 = dma.vmem_to_hbm [thread:$0]  %s943_s13, 32, %s945_s3, [#allocation4]  }
 0x991   :  { %1248 = dma.done.wait [#allocation4], 32  }
 0x992   :  { %1249 = vsyncadd [#allocation4], 4294967264 }
 0x993   :  { %952 = vsyncpa [#allocation3], 1 }
 0x994   :  { %953 = vsyncpa [#allocation6], 1 }
 0x995   :  { %954 = vsyncpa [#allocation9], 1 }
 0x996   :  { %955 = vsyncpa [#allocation12], 1 }
 0x997   :  { %956 = vsyncpa [#allocation4], 1 }

// kernel: tpu_custom_call.1
= control target key start
LH: loop header
LB: loop body
LE: loop exit
PB: predicated region body
PF: predicated region fallthrough
CT: control target
= control target key end

     0   :  { %17 = vsyncpa [#allocation3], 0  ;;  %s1645_s0 = inlined_call_operand.hbm [shape: f32[2,16,32], index: 0, kind: input, shape index: {}]   ;;  %s1646_s1 = inlined_call_operand.vmem [shape: f32[2,32], index: 1, kind: input, shape index: {}]   ;;  %s1647_s2 = inlined_call_operand.hbm [shape: f32[32,256], index: 2, kind: input, shape index: {}]   ;;  %s1648_s3 = inlined_call_operand.hbm [shape: f32[1,256], index: 3, kind: input, shape index: {}]   ;;  %s1649_s4 = inlined_call_operand.hbm [shape: f32[32,384], index: 4, kind: input, shape index: {}]   ;;  %s1650_s5 = inlined_call_operand.vmem [shape: f32[128,2], index: 5, kind: input, shape index: {}]   ;;  %s1651_s6 = inlined_call_operand.vmem [shape: f32[128,128], index: 6, kind: input, shape index: {}]   ;;  %s1652_s7 = inlined_call_operand.vmem [shape: f32[1,128], index: 7, kind: input, shape index: {}]   ;;  %s1653_s8 = inlined_call_operand.hbm [shape: f32[128,128], index: 8, kind: input, shape index: {}]   ;;  %s1654_s9 = inlined_call_operand.vmem [shape: f32[1,128], index: 9, kind: input, shape index: {}]   ;;  %s1655_s10 = inlined_call_operand.hbm [shape: f32[128,128], index: 10, kind: input, shape index: {}]   ;;  %s1656_s11 = inlined_call_operand.vmem [shape: f32[1,128], index: 11, kind: input, shape index: {}]   ;;  %s1657_s12 = inlined_call_operand.hbm [shape: f32[2,128], index: 12, kind: output, shape index: {}]  }
   0x1   :  { %18 = vsyncpa [#allocation6], 0 }
   0x2   :  { %19 = vsyncpa [#allocation9], 0 }
   0x3   :  { %20 = vsyncpa [#allocation12], 0  ;;  %s41_s23 = sshll.u32 %s1647_s2, 4  ;;  %s42_s23 = int_to_ptr.hbm [resolvable:$true] %s41_s23 }
   0x4   :  { %21 = vsyncpa [#allocation4], 0  ;;  %s1250_s24 = smov [#allocation5]   ;;  %s65_s28 = sshll.u32 %s1649_s4, 4  ;;  %s66_s28 = int_to_ptr.hbm [resolvable:$true] %s65_s28 }
   0x5   :  { %s43_s25 = sshll.u32 %s1250_s24, 4  ;;  %s1251_s29 = smov 256   ;;  %s44_s25 = int_to_ptr.vmem [resolvable:$true] %s43_s25 }
   0x6   :  { %s1252_s30 = smov 16   ;;  %s1253_s13 = smov [#allocation8]  }
   0x7   :  { %49 = dma.hbm_to_vmem [thread:$0]  %s42_s23, 1024, %s44_s25, [#allocation6], %s1251_s29, %s1251_s29, %s1252_s30  }
   0x8   :  { %s67_s14 = sshll.u32 %s1253_s13, 4  ;;  %s1254_s15 = smov 384   ;;  %s68_s14 = int_to_ptr.vmem [resolvable:$true] %s67_s14 }
   0x9   :  { %s1255_s16 = smov 24   ;;  %s26_s18 = sshll.u32 %s1645_s0, 4  ;;  %s27_s18 = int_to_ptr.hbm [resolvable:$true] %s26_s18 }
   0xa   :  { %73 = dma.hbm_to_vmem [thread:$0]  %s66_s28, 1536, %s68_s14, [#allocation9], %s1254_s15, %s1254_s15, %s1255_s16  }
   0xb   :  { %s1256_s19 = smov [#allocation2]   ;;  %s55_s22 = sshll.u32 %s1648_s3, 4  ;;  %s56_s22 = int_to_ptr.hbm [resolvable:$true] %s55_s22 }
   0xc   :  { %s28_s20 = sshll.u32 %s1256_s19, 4  ;;  %s1257_s23 = smov 128   ;;  %s29_s20 = int_to_ptr.vmem [resolvable:$true] %s28_s20 }
   0xd   :  { %s1258_s24 = smov 8   ;;  %s1259_s25 = smov [#allocation7]  }
   0xe   :  { %34 = dma.hbm_to_vmem [thread:$0]  %s27_s18, 512, %s29_s20, [#allocation3], %s1257_s23, %s1257_s23, %s1258_s24  }
   0xf   :  { %s57_s26 = sshll.u32 %s1259_s25, 4  ;;  %s84_s29 = sshll.u32 %s1653_s8, 4  ;;  %s58_s26 = int_to_ptr.vmem [resolvable:$true] %s57_s26  ;;  %s85_s29 = int_to_ptr.hbm [resolvable:$true] %s84_s29 }
  0x10   :  { %60 = dma.hbm_to_vmem [thread:$0]  %s56_s22, 32, %s58_s26, [#allocation6]  }
  0x11   :  { %s99_s13 = sshll.u32 %s1655_s10, 4  ;;  %s1260_s14 = smov [#allocation10]   ;;  %s100_s13 = int_to_ptr.hbm [resolvable:$true] %s99_s13 }
  0x12   :  { %s86_s15 = sshll.u32 %s1260_s14, 4  ;;  %s1261_s3 = smov [#allocation11]   ;;  %s87_s15 = int_to_ptr.vmem [resolvable:$true] %s86_s15 }
  0x13   :  { %92 = dma.hbm_to_vmem [thread:$0]  %s85_s29, 2048, %s87_s15, [#allocation9], %s1257_s23, %s1257_s23, %s1258_s24  }
  0x14   :  { %s101_s16 = sshll.u32 %s1261_s3, 4  ;;  %s102_s16 = int_to_ptr.vmem [resolvable:$true] %s101_s16 }
  0x15   :  { %107 = dma.hbm_to_vmem [thread:$0]  %s100_s13, 2048, %s102_s16, [#allocation12], %s1257_s23, %s1257_s23, %s1258_s24  }
  0x16   :  { %1240 = dma.done.wait [#allocation3], 512  }
  0x17   :  { %1241 = vsyncadd [#allocation3], 4294966784 }
  0x18   :  { %1242 = dma.done.wait [#allocation6], 1056  }
  0x19   :  { %1243 = vsyncadd [#allocation6], 4294966240 }
  0x1a   :  { %1244 = dma.done.wait [#allocation9], 3584  }
  0x1b   :  { %1245 = vsyncadd [#allocation9], 4294963712 }
  0x1c   :  { %1246 = dma.done.wait [#allocation12], 2048  }
  0x1d   :  { %1247 = vsyncadd [#allocation12], 4294965248  ;;  %v206_v0 = vld [vmem:[#allocation8 + $0x48] sm:$0xff]  ;;  %v203_v2 = vld [vmem:[#allocation8 + $0x30] sm:$0xff]  ;;  %vm153_vm0 = vcmask 261120   ;;  %v1262_v47 = vmov 0  }
  0x1e   :  { %v145_v1 = vld [vmem:[#allocation5 + $0x30] sm:$0xff]  ;;  %233 = vmatpush.msra.mxu2 %v206_v0  ;;  %v143_v3 = vld [vmem:[#allocation5 + $0x20] sm:$0xff]  ;;  %v1358_v12 = vld [vmem:[%s1650_s5 + $0x78] sm:$0xff]  ;;  %990 = vset.pattern.permute.xlu0 %v1262_v47  ;;  %vm388_vm1 = vcmask 130112   ;;  %vm393_vm2 = vcmask 1041409   ;;  %vm396_vm3 = vcmask 123904  }
  0x1f   :  { %169 = vmatpush.msra.mxu1 %v145_v1  ;;  %v200_v4 = vld [vmem:[#allocation8 + $0x18] sm:$0xff]  ;;  %v141_v5 = vld [vmem:[#allocation5 + $0x10] sm:$0xff]  ;;  %v197_v6 = vld [vmem:[#allocation8] sm:$0xff]  ;;  %991 = vset.pattern.permute.xlu1 %v1262_v47  ;;  %vm479_vm8 = vcmask 130048   ;;  %s1263_s17 = smov 127   ;;  %s1264_s30 = smov [#allocation13]  }
  0x20   :  { %234 = vmatpush.msra.mxu2 %v203_v2  ;;  %v1348_v7 = vld [vmem:[#allocation2] sm:$0xff]  ;;  %v207_v9 = vld [vmem:[#allocation8 + $0x50] sm:$0xff]  ;;  %v1368_v14 = vld [vmem:[%s1650_s5 + $0x68] sm:$0xff]  ;;  %992 = vset.pattern.permute.xlu2 %v1262_v47  ;;  %s942_s13 = sshll.u32 %s1264_s30, 4  ;;  %s944_s3 = sshll.u32 %s1657_s12, 4  ;;  %s943_s13 = int_to_ptr.vmem [resolvable:$true] %s942_s13  ;;  %s945_s3 = int_to_ptr.hbm [resolvable:$true] %s944_s3 }
  0x21   :  { %170 = vmatpush.msra.mxu1 %v143_v3  ;;  %v139_v8 = vld [vmem:[#allocation5] sm:$0xff]  ;;  %262 = vmatpush.msra.mxu3 %v207_v9  ;;  %v1363_v13 = vld [vmem:[%s1650_s5 + $0x70] sm:$0xff]  ;;  %v1382_v18 = vld [vmem:[%s1650_s5 + $0x58] sm:$0xff] }
  0x22   :  { %235 = vmatpush.msra.mxu2 %v200_v4  ;;  %v1353_v10 = vld [vmem:[%s1646_s1] sm:$0x3]  ;;  %v993_v16 = vpack.i.bf16 %v1363_v13, %v1358_v12  ;;  %v1387_v19 = vld [vmem:[%s1650_s5 + $0x50] sm:$0xff]  ;;  %v201_v20 = vld [vmem:[#allocation8 + $0x20] sm:$0xff] }
  0x23   :  { %171 = vmatpush.msra.mxu1 %v141_v5  ;;  %v204_v11 = vld [vmem:[#allocation8 + $0x38] sm:$0xff]  ;;  %v1003_v21 = vpack.i.bf16 %v1387_v19, %v1382_v18  ;;  %v1398_v22 = vld [vmem:[%s1650_s5 + $0x48] sm:$0xff]  ;;  %v1416_v27 = vld [vmem:[#allocation2 + $0x10] sm:$0xff]  ;;  %v383_v5 = vlaneseq }
  0x24   :  { %v1373_v15 = vld [vmem:[%s1650_s5 + $0x60] sm:$0xff]  ;;  %236 = vmatpush.msra.mxu2 %v197_v6  ;;  %263 = vmatpush.msra.mxu3 %v204_v11  ;;  %v198_v25 = vld [vmem:[#allocation8 + $0x8] sm:$0xff]  ;;  %v1429_v28 = vld [vmem:[%s1650_s5 + $0x38] sm:$0xff] }
  0x25   :  { %172 = vmatpush.msra.mxu1 %v139_v8  ;;  %v998_v17 = vpack.i.bf16 %v1373_v15, %v1368_v14  ;;  %959 = vmatmul.msk.f32.vlgmr.msra.gmra.mxu2 %vm153_vm0, %v1348_v7  ;;  %v1403_v23 = vld [vmem:[%s1650_s5 + $0x40] sm:$0xff]  ;;  %v1407_v26 = vld [vmem:[#allocation2 + $0x8] sm:$0xff]  ;;  %v1431_v29 = vld [vmem:[#allocation2 + $0x18] sm:$0xff]  ;;  %v1492_v8 = vand.u32 127, %v383_v5 }
  0x26   :  { %957 = vmatmul.msk.f32.vlgmr.msra.gmra.mxu1 %vm153_vm0, %v1353_v10  ;;  %v1008_v24 = vpack.i.bf16 %v1403_v23, %v1398_v22  ;;  %264 = vmatpush.msra.mxu3 %v201_v20  ;;  %v1444_v30 = vld [vmem:[%s1650_s5 + $0x30] sm:$0xff]  ;;  %v1450_v31 = vld [vmem:[%s1650_s5 + $0x28] sm:$0xff]  ;;  %v1456_v32 = vld [vmem:[%s1650_s5 + $0x20] sm:$0xff] }
  0x27   :  { %v1462_v33 = vld [vmem:[%s1650_s5 + $0x18] sm:$0xff]  ;;  %v1018_v34 = vpack.i.bf16 %v1456_v32, %v1450_v31  ;;  %v1470_v35 = vld [vmem:[%s1650_s5 + $0x10] sm:$0xff]  ;;  %v1477_v37 = vld [vmem:[%s1650_s5 + $0x8] sm:$0xff]  ;;  %v1495_v9 = vadd.s32 4294967288, %v1492_v8 }
  0x28   :  { %265 = vmatpush.msra.mxu3 %v198_v25  ;;  %v1023_v36 = vpack.i.bf16 %v1470_v35, %v1462_v33  ;;  %v1484_v38 = vld [vmem:[%s1650_s5] sm:$0xff] }
  0x29   :  { %963 = vmatmul.msk.f32.vlgmr.msra.gmra.mxu3 %vm153_vm0, %v1348_v7  ;;  %v1028_v39 = vpack.i.bf16 %v1484_v38, %v1477_v37  ;;  %v1489_v40 = vld [vmem:[#allocation7] sm:$0x3] }
  0x2a   :  { %338 = vmatpush.msrb.mxu3 %v1358_v12  ;;  %v149_v41 = vperm.slane %v1489_v40, 0  ;;  %v1013_v12 = vpack.i.bf16 %v1444_v30, %v1429_v28 }
  0x2c   :  { %339 = vmatpush.msrb.mxu3 %v1363_v13  ;;  %v546_v13 = vld [vmem:[%s1651_s6 + $0x28] sm:$0xff] }
  0x2d   :  { %960 = vmatmul.msk.f32.gmra.mxu2 %vm153_vm0, %v1407_v26 }
  0x2e   :  { %340 = vmatpush.msrb.mxu3 %v1368_v14  ;;  %v545_v14 = vld [vmem:[%s1651_s6 + $0x20] sm:$0xff] }
  0x30   :  { %341 = vmatpush.msrb.mxu3 %v1373_v15  ;;  %v544_v15 = vld [vmem:[%s1651_s6 + $0x18] sm:$0xff] }
  0x31   :  { %964 = vmatmul.msk.f32.gmra.mxu3 %vm153_vm0, %v1407_v26 }
  0x32   :  { %342 = vmatpush.msrb.mxu3 %v1382_v18  ;;  %v541_v18 = vld [vmem:[%s1651_s6] sm:$0xff] }
  0x34   :  { %343 = vmatpush.msrb.mxu3 %v1387_v19 }
  0x35   :  { %961 = vmatmul.msk.f32.gmra.mxu2 %vm153_vm0, %v1416_v27 }
  0x36   :  { %344 = vmatpush.msrb.mxu3 %v1398_v22 }
  0x38   :  { %345 = vmatpush.msrb.mxu3 %v1403_v23 }
  0x39   :  { %965 = vmatmul.msk.f32.gmra.mxu3 %vm153_vm0, %v1416_v27 }
  0x3a   :  { %346 = vmatpush.msrb.mxu3 %v1429_v28 }
  0x3c   :  { %347 = vmatpush.msrb.mxu3 %v1444_v30 }
  0x3d   :  { %962 = vmatmul.msk.f32.gmra.mxu2 %vm153_vm0, %v1431_v29 }
  0x3e   :  { %348 = vmatpush.msrb.mxu3 %v1450_v31 }
  0x40   :  { %349 = vmatpush.msrb.mxu3 %v1456_v32 }
  0x41   :  { %966 = vmatmul.msk.f32.gmra.mxu3 %vm153_vm0, %v1431_v29 }
  0x42   :  { %350 = vmatpush.msrb.mxu3 %v1462_v33 }
  0x44   :  { %351 = vmatpush.msrb.mxu3 %v1470_v35 }
  0x46   :  { %352 = vmatpush.msrb.mxu3 %v1477_v37 }
  0x48   :  { %353 = vmatpush.msrb.mxu3 %v1484_v38  ;;  %v150_v38 = vperm.slane %v1489_v40, 1 }
  0xa3   :  { %v174_v42 = vpop.f32.mrf.mxu1 }
  0xa4   :  { %v175_v43 = vadd.f32 %v174_v42, %v149_v41 }
  0xa6   :  { %v326_v44 = vperm.slane %v175_v43, 0  ;;  %v325_v52 = vrot.slane %v175_v43, 1 }
  0xa8   :  { %v238_v45 = vpop.f32.mrf.mxu2  ;;  %v327_v54 = vperm.slane %v325_v52, 0 }
  0xa9   :  { %v330_v46 = vadd.f32 %v326_v44, %v238_v45 }
  0xab   :  { %1036 = vtanh.f32 %v330_v46 }
  0xac   :  { %v267_v48 = vpop.f32.mrf.mxu3 }
  0xb0   :  { %v241_v49 = vpop.f32.mrf.mxu2 }
  0xb1   :  { %v1037_v50 = vpop.eup %1036  ;;  %v331_v51 = vadd.f32 %v326_v44, %v241_v49 }
  0xb2   :  { %354 = vmatmul.f32.vlgmr.msrb.gmra.mxu3 %v1037_v50 }
  0xb3   :  { %1038 = vtanh.f32 %v331_v51 }
  0xb4   :  { %v270_v53 = vpop.f32.mrf.mxu3 }
  0xb5   :  { %496 = vmatpush.msrb.mxu2 %v270_v53 }
  0xb7   :  { %497 = vmatpush.msrb.mxu2 %v267_v48 }
  0xb8   :  { %v244_v55 = vpop.f32.mrf.mxu2 }
  0xb9   :  { %v1039_v56 = vpop.eup %1038  ;;  %v332_v57 = vadd.f32 %v327_v54, %v244_v55 }
  0xba   :  { %357 = vmatmul.f32.gmra.mxu3 %v1039_v56 }
  0xbb   :  { %1040 = vtanh.f32 %v332_v57 }
  0xbc   :  { %v273_v58 = vpop.f32.mrf.mxu3 }
  0xc0   :  { %v247_v59 = vpop.f32.mrf.mxu2 }
  0xc1   :  { %v1041_v60 = vpop.eup %1040  ;;  %v333_v61 = vadd.f32 %v327_v54, %v247_v59 }
  0xc2   :  { %360 = vmatmul.f32.gmra.mxu3 %v1041_v60 }
  0xc3   :  { %1042 = vtanh.f32 %v333_v61 }
  0xc4   :  { %v276_v62 = vpop.f32.mrf.mxu3 }
  0xc5   :  { %529 = vmatpush.msra.mxu3 %v276_v62 }
  0xc7   :  { %530 = vmatpush.msra.mxu3 %v273_v58 }
  0xc9   :  { %v1043_v63 = vpop.eup %1042 }
  0xca   :  { %363 = vmatmul.f32.gmra.mxu3 %v1043_v63 }
 0x135   :  { %v355_v0 = vpop.f32.mrf.mxu3 }
 0x136   :  { %372 = vperm.xlu0 %990, %v355_v0  }
 0x13d   :  { %v358_v1 = vpop.f32.mrf.mxu3 }
 0x13e   :  { %375 = vperm.xlu0 %990, %v358_v1  }
 0x145   :  { %v361_v2 = vpop.f32.mrf.mxu3 }
 0x146   :  { %378 = vperm.xlu1 %991, %v361_v2  }
 0x14d   :  { %v364_v3 = vpop.f32.mrf.mxu3 }
 0x14e   :  { %381 = vperm.xlu1 %991, %v364_v3  }
 0x1a8   :  { %v373_v4 = vpop.permute.xlu0 %372 }
 0x1a9   :  { %v385_v41 = vperm.slane %v373_v4, %v1492_v8 }
 0x1b0   :  { %v376_v11 = vpop.permute.xlu0 %375 }
 0x1b1   :  { %v387_v20 = vperm.slane %v376_v11, %v1495_v9 }
 0x1b3   :  { %v389_v44 = vsel %vm388_vm1, %v387_v20, %v385_v41 }
 0x1b8   :  { %v379_v6 = vpop.permute.xlu1 %378 }
 0x1b9   :  { %v390_v42 = vperm.slane %v379_v6, %v1492_v8 }
 0x1c0   :  { %v382_v25 = vpop.permute.xlu1 %381 }
 0x1c1   :  { %v391_v43 = vperm.slane %v382_v25, %v1495_v9 }
 0x1c3   :  { %v392_v45 = vsel %vm388_vm1, %v391_v43, %v390_v42 }
 0x1c4   :  { %v394_v46 = vsel %vm393_vm2, %v392_v45, %v389_v44 }
 0x1c5   :  { %v397_v47 = vsel %vm396_vm3, %v394_v46, -inf }
 0x1c6   :  { %398 = vmax.xlane.f32.xlu2 %v397_v47 }
 0x239   :  { %v399_v48 = vpop.xlane.xlu2 %398 }
 0x23a   :  { %v401_v49 = vperm.slane %v399_v48, 0  ;;  %v402_v50 = vperm.slane %v399_v48, 1 }
 0x23c   :  { %v405_v51 = vsub.f32 %v355_v0, %v401_v49  ;;  %v406_v52 = vsub.f32 %v358_v1, %v401_v49  ;;  %v407_v53 = vsub.f32 %v361_v2, %v402_v50  ;;  %v408_v57 = vsub.f32 %v364_v3, %v402_v50 }
 0x23e   :  { %v409_v54 = vmul.f32 1.442695, %v405_v51  ;;  %v411_v55 = vmul.f32 1.442695, %v406_v52  ;;  %v413_v56 = vmul.f32 1.442695, %v407_v53 }
 0x23f   :  { %v415_v58 = vmul.f32 1.442695, %v408_v57 }
 0x240   :  { %1044 = vpow2.f32 %v409_v54 }
 0x241   :  { %1046 = vpow2.f32 %v411_v55 }
 0x242   :  { %1048 = vpow2.f32 %v413_v56 }
 0x243   :  { %1050 = vpow2.f32 %v415_v58 }
 0x246   :  { %v1045_v59 = vpop.eup %1044 }
 0x247   :  { %v1047_v60 = vpop.eup %1046  ;;  %422 = vperm.xlu2 %992, %v1045_v59  }
 0x248   :  { %v1049_v61 = vpop.eup %1048  ;;  %425 = vperm.xlu0 %990, %v1047_v60  }
 0x249   :  { %428 = vperm.xlu1 %991, %v1049_v61   ;;  %v1051_v62 = vpop.eup %1050 }
 0x250   :  { %431 = vperm.xlu0 %990, %v1051_v62  }
 0x2a1   :  { %v423_v0 = vpop.permute.xlu2 %422 }
 0x2a2   :  { %v433_v3 = vperm.slane %v423_v0, %v1492_v8  ;;  %v144_v0 = vld [vmem:[#allocation5 + $0x28] sm:$0xff] }
 0x2ba   :  { %v426_v63 = vpop.permute.xlu0 %425 }
 0x2bb   :  { %v429_v1 = vpop.permute.xlu1 %428  ;;  %v434_v2 = vperm.slane %v426_v63, %v1495_v9  ;;  %v146_v63 = vld [vmem:[#allocation5 + $0x38] sm:$0xff] }
 0x2bc   :  { %v436_v5 = vperm.slane %v429_v1, %v1492_v8  ;;  %189 = vmatpush.msrb.mxu1 %v146_v63  ;;  %v142_v1 = vld [vmem:[#allocation5 + $0x18] sm:$0xff] }
 0x2bd   :  { %v435_v11 = vsel %vm388_vm1, %v434_v2, %v433_v3  ;;  %v208_v2 = vld [vmem:[#allocation8 + $0x58] sm:$0xff]  ;;  %v205_v3 = vld [vmem:[#allocation8 + $0x40] sm:$0xff] }
 0x2be   :  { %190 = vmatpush.msrb.mxu1 %v144_v0  ;;  %291 = vmatpush.msra.mxu0 %v208_v2 }
 0x2c0   :  { %191 = vmatpush.msrb.mxu1 %v142_v1  ;;  %292 = vmatpush.msra.mxu0 %v205_v3 }
 0x2c2   :  { %v432_v4 = vpop.permute.xlu0 %431 }
 0x2c3   :  { %v437_v6 = vperm.slane %v432_v4, %v1495_v9  ;;  %v140_v4 = vld [vmem:[#allocation5 + $0x8] sm:$0xff] }
 0x2c4   :  { %192 = vmatpush.msrb.mxu1 %v140_v4 }
 0x2c5   :  { %v438_v20 = vsel %vm388_vm1, %v437_v6, %v436_v5  ;;  %v202_v5 = vld [vmem:[#allocation8 + $0x28] sm:$0xff]  ;;  %958 = vmatmul.msk.f32.vlgmr.msrb.gmra.mxu1 %vm153_vm0, %v1353_v10  ;;  %v553_v10 = vld [vmem:[%s1651_s6 + $0x60] sm:$0xff]  ;;  %v552_v6 = vld [vmem:[%s1651_s6 + $0x58] sm:$0xff] }
 0x2c6   :  { %v439_v25 = vsel %vm393_vm2, %v438_v20, %v435_v11  ;;  %293 = vmatpush.msra.mxu0 %v202_v5  ;;  %v551_v11 = vld [vmem:[%s1651_s6 + $0x50] sm:$0xff]  ;;  %v550_v20 = vld [vmem:[%s1651_s6 + $0x48] sm:$0xff] }
 0x2c7   :  { %v441_v41 = vsel %vm396_vm3, %v439_v25, 0.0 }
 0x2c8   :  { %442 = vadd.xlane.f32.xlu1 %v441_v41  ;;  %v549_v41 = vld [vmem:[%s1651_s6 + $0x40] sm:$0xff] }
 0x2e1   :  { %1024 = vrot.lane.b32.xlu1 %v1023_v36, %s1263_s17 }
 0x33b   :  { %v443_v42 = vpop.xlane.xlu1 %442 }
 0x33c   :  { %1052 = vrcp.f32 %v443_v42  ;;  %v455_v46 = vand.u32 2147483648, %v443_v42  ;;  %v453_v48 = vand.u32 2147483647, %v443_v42  ;;  %vm449_vm5 = vweird.f32 %v443_v42 }
 0x33e   :  { %v456_v50 = vor.u32 1.1754944e-38, %v455_v46  ;;  %vm454_vm7 = vcmp.eq.f32.partialorder %v453_v48, 8.507059e+37 }
 0x342   :  { %v1053_v43 = vpop.eup %1052 }
 0x343   :  { %v445_v44 = vmul.f32 %v1053_v43, %v443_v42  ;;  %vm450_vm4 = vweird.f32 %v1053_v43 }
 0x344   :  { %vm451_vm6 = vmor %vm449_vm5, %vm450_vm4 }
 0x345   :  { %v446_v45 = vsub.f32 1.0, %v445_v44 }
 0x347   :  { %v447_v47 = vmul.f32 %v1053_v43, %v446_v45  ;;  %v547_v45 = vld [vmem:[%s1651_s6 + $0x30] sm:$0xff] }
 0x349   :  { %v448_v49 = vadd.f32 %v1053_v43, %v447_v47 }
 0x34b   :  { %v452_v51 = vsel %vm451_vm6, %v1053_v43, %v448_v49 }
 0x34c   :  { %v457_v52 = vsel %vm454_vm7, %v456_v50, %v452_v51 }
 0x34d   :  { %v461_v53 = vperm.slane %v457_v52, 1  ;;  %v460_v56 = vperm.slane %v457_v52, 0 }
 0x34f   :  { %v467_v54 = vmul.f32 %v1051_v62, %v461_v53  ;;  %v466_v55 = vmul.f32 %v1049_v61, %v461_v53  ;;  %v465_v57 = vmul.f32 %v1047_v60, %v460_v56  ;;  %v464_v58 = vmul.f32 %v1045_v59, %v460_v56  ;;  %v199_v61 = vld [vmem:[#allocation8 + $0x10] sm:$0xff]  ;;  %v554_v62 = vld [vmem:[%s1651_s6 + $0x68] sm:$0xff] }
 0x350   :  { %v556_v59 = vld [vmem:[%s1651_s6 + $0x78] sm:$0xff]  ;;  %294 = vmatpush.msra.mxu0 %v199_v61  ;;  %v555_v60 = vld [vmem:[%s1651_s6 + $0x70] sm:$0xff] }
 0x351   :  { %508 = vperm.xlu2 %992, %v467_v54   ;;  %505 = vperm.xlu0 %990, %v466_v55  }
 0x352   :  { %967 = vmatmul.msk.f32.vlgmr.msra.gmra.mxu0 %vm153_vm0, %v1348_v7 }
 0x353   :  { %561 = vmatpush.msrb.mxu0 %v556_v59  ;;  %v1025_v2 = vpop.permute.xlu1 %1024 }
 0x354   :  { %v1026_v4 = vunpack.i.l.bf16 %v1025_v2  ;;  %v1027_v3 = vunpack.i.h.bf16 %v1025_v2 }
 0x355   :  { %562 = vmatpush.msrb.mxu0 %v555_v60  ;;  %v1033_v60 = vld [vmem:[%s1652_s7] ss:$0 sm:$0xff] }
 0x357   :  { %563 = vmatpush.msrb.mxu0 %v554_v62 }
 0x359   :  { %474 = vperm.xlu2 %992, %v465_v57   ;;  %471 = vperm.xlu0 %990, %v464_v58  }
 0x35a   :  { %564 = vmatpush.msrb.mxu0 %v553_v10 }
 0x35b   :  { %968 = vmatmul.msk.f32.gmra.mxu0 %vm153_vm0, %v1407_v26  ;;  %v548_v26 = vld [vmem:[%s1651_s6 + $0x38] sm:$0xff] }
 0x35c   :  { %565 = vmatpush.msrb.mxu0 %v552_v6 }
 0x35e   :  { %566 = vmatpush.msrb.mxu0 %v551_v11 }
 0x360   :  { %567 = vmatpush.msrb.mxu0 %v550_v20 }
 0x361   :  { %994 = vrot.lane.b32.xlu0 %v993_v16, %s1263_s17  ;;  %999 = vrot.lane.b32.xlu2 %v998_v17, %s1263_s17  ;;  %v543_v16 = vld [vmem:[%s1651_s6 + $0x10] sm:$0xff]  ;;  %v542_v17 = vld [vmem:[%s1651_s6 + $0x8] sm:$0xff] }
 0x362   :  { %568 = vmatpush.msrb.mxu0 %v549_v41 }
 0x363   :  { %969 = vmatmul.msk.f32.gmra.mxu0 %vm153_vm0, %v1416_v27 }
 0x364   :  { %569 = vmatpush.msrb.mxu0 %v548_v26 }
 0x366   :  { %570 = vmatpush.msrb.mxu0 %v547_v45 }
 0x368   :  { %571 = vmatpush.msrb.mxu0 %v546_v13 }
 0x369   :  { %1004 = vrot.lane.b32.xlu0 %v1003_v21, %s1263_s17  ;;  %1009 = vrot.lane.b32.xlu2 %v1008_v24, %s1263_s17 }
 0x36a   :  { %572 = vmatpush.msrb.mxu0 %v545_v14 }
 0x36b   :  { %970 = vmatmul.msk.f32.gmra.mxu0 %vm153_vm0, %v1431_v29 }
 0x36c   :  { %573 = vmatpush.msrb.mxu0 %v544_v15 }
 0x36e   :  { %574 = vmatpush.msrb.mxu0 %v543_v16 }
 0x370   :  { %575 = vmatpush.msrb.mxu0 %v542_v17 }
 0x371   :  { %1014 = vrot.lane.b32.xlu0 %v1013_v12, %s1263_s17  ;;  %1019 = vrot.lane.b32.xlu2 %v1018_v34, %s1263_s17 }
 0x372   :  { %576 = vmatpush.msrb.mxu0 %v541_v18 }
 0x379   :  { %1029 = vrot.lane.b32.xlu0 %v1028_v39, %s1263_s17  ;;  %v194_v39 = vpop.f32.mrf.mxu1 }
 0x37a   :  { %v195_v56 = vadd.f32 %v194_v39, %v150_v38 }
 0x3ab   :  { %v509_v7 = vpop.permute.xlu2 %508 }
 0x3ac   :  { %v511_v42 = vperm.slane %v509_v7, %v1495_v9 }
 0x3b3   :  { %v475_v46 = vpop.permute.xlu2 %474 }
 0x3b4   :  { %v477_v48 = vperm.slane %v475_v46, %v1495_v9 }
 0x3bb   :  { %v1000_v21 = vpop.permute.xlu2 %999 }
 0x3bc   :  { %v1001_v29 = vunpack.i.l.bf16 %v1000_v21  ;;  %v1002_v30 = vunpack.i.h.bf16 %v1000_v21 }
 0x3c3   :  { %v506_v25 = vpop.permute.xlu0 %505  ;;  %v1010_v31 = vpop.permute.xlu2 %1009 }
 0x3c4   :  { %v510_v43 = vperm.slane %v506_v25, %v1492_v8  ;;  %v1011_v36 = vunpack.i.l.bf16 %v1010_v31  ;;  %v1012_v37 = vunpack.i.h.bf16 %v1010_v31 }
 0x3c6   :  { %v512_v44 = vsel %vm388_vm1, %v511_v42, %v510_v43 }
 0x3c7   :  { %972 = vmatmul.msk.f32.vlgmr.msra.gmra.mxu3 %vm479_vm8, %v512_v44 }
 0x3cb   :  { %v472_v47 = vpop.permute.xlu0 %471  ;;  %v1020_v51 = vpop.permute.xlu2 %1019 }
 0x3cc   :  { %v476_v49 = vperm.slane %v472_v47, %v1492_v8  ;;  %v1021_v58 = vunpack.i.l.bf16 %v1020_v51  ;;  %v1022_v1 = vunpack.i.h.bf16 %v1020_v51 }
 0x3ce   :  { %v478_v27 = vsel %vm388_vm1, %v477_v48, %v476_v49 }
 0x3cf   :  { %971 = vmatmul.msk.f32.vlgmr.msrb.gmra.mxu2 %vm479_vm8, %v478_v27  ;;  %v296_v19 = vpop.f32.mrf.mxu0 }
 0x3d3   :  { %v995_v23 = vpop.permute.xlu0 %994 }
 0x3d4   :  { %v997_v24 = vunpack.i.h.bf16 %v995_v23  ;;  %v996_v28 = vunpack.i.l.bf16 %v995_v23 }
 0x3d6   :  { %659 = vmatpush.msra.mxu1 %v996_v28 }
 0x3d8   :  { %v299_v22 = vpop.f32.mrf.mxu0  ;;  %660 = vmatpush.msra.mxu1 %v997_v24 }
 0x3d9   :  { %810 = vmatpush.msra.mxu2 %v299_v22 }
 0x3da   :  { %661 = vmatpush.msra.mxu1 %v1001_v29 }
 0x3db   :  { %811 = vmatpush.msra.mxu2 %v296_v19  ;;  %v1005_v33 = vpop.permute.xlu0 %1004 }
 0x3dc   :  { %v1007_v34 = vunpack.i.h.bf16 %v1005_v33  ;;  %v1006_v35 = vunpack.i.l.bf16 %v1005_v33  ;;  %662 = vmatpush.msra.mxu1 %v1002_v30 }
 0x3de   :  { %663 = vmatpush.msra.mxu1 %v1006_v35 }
 0x3e0   :  { %v302_v32 = vpop.f32.mrf.mxu0  ;;  %664 = vmatpush.msra.mxu1 %v1007_v34 }
 0x3e2   :  { %665 = vmatpush.msra.mxu1 %v1011_v36 }
 0x3e3   :  { %v1015_v53 = vpop.permute.xlu0 %1014 }
 0x3e4   :  { %v1017_v54 = vunpack.i.h.bf16 %v1015_v53  ;;  %v1016_v55 = vunpack.i.l.bf16 %v1015_v53  ;;  %666 = vmatpush.msra.mxu1 %v1012_v37 }
 0x3e6   :  { %667 = vmatpush.msra.mxu1 %v1016_v55 }
 0x3e8   :  { %v305_v52 = vpop.f32.mrf.mxu0  ;;  %668 = vmatpush.msra.mxu1 %v1017_v54 }
 0x3e9   :  { %843 = vmatpush.msrb.mxu3 %v305_v52 }
 0x3ea   :  { %669 = vmatpush.msra.mxu1 %v1021_v58 }
 0x3eb   :  { %844 = vmatpush.msrb.mxu3 %v302_v32  ;;  %v1030_v5 = vpop.permute.xlu0 %1029 }
 0x3ec   :  { %670 = vmatpush.msra.mxu1 %v1022_v1  ;;  %v1031_v61 = vunpack.i.l.bf16 %v1030_v5  ;;  %v1032_v59 = vunpack.i.h.bf16 %v1030_v5 }
 0x3ee   :  { %671 = vmatpush.msra.mxu1 %v1026_v4 }
 0x3f0   :  { %672 = vmatpush.msra.mxu1 %v1027_v3 }
 0x3f2   :  { %673 = vmatpush.msra.mxu1 %v1031_v61 }
 0x3f4   :  { %674 = vmatpush.msra.mxu1 %v1032_v59 }
 0x44a   :  { %v532_v50 = vpop.f32.mrf.mxu3 }
 0x44b   :  { %v537_v57 = vrot.slane %v532_v50, 7 }
 0x452   :  { %v499_v63 = vpop.f32.mrf.mxu2 }
 0x453   :  { %v538_v0 = vsel %vm393_vm2, %v537_v57, %v499_v63 }
 0x454   :  { %v1604_v40 = vadd.f32 %v538_v0, %v195_v56 }
 0x456   :  { %577 = vmatmul.f32.vlgmr.msrb.gmra.mxu0 %v1604_v40 }
 0x4d3   :  { %v578_v62 = vpop.f32.mrf.mxu0 }
 0x4d4   :  { %v579_v10 = vadd.f32 %v1033_v60, %v578_v62 }
 0x4d6   :  { %v583_v6 = vperm.slane %v579_v10, 0  ;;  %v582_v11 = vrot.slane %v579_v10, 1 }
 0x4d8   :  { %v587_v7 = vadd.f32 %v583_v6, %v296_v19  ;;  %v588_v20 = vadd.f32 %v583_v6, %v299_v22  ;;  %v584_v41 = vperm.slane %v582_v11, 0 }
 0x4da   :  { %1054 = vtanh.f32 %v587_v7  ;;  %v589_v42 = vadd.f32 %v584_v41, %v302_v32  ;;  %v590_v26 = vadd.f32 %v584_v41, %v305_v52 }
 0x4db   :  { %1056 = vtanh.f32 %v588_v20 }
 0x4dc   :  { %1058 = vtanh.f32 %v589_v42 }
 0x4dd   :  { %1060 = vtanh.f32 %v590_v26 }
 0x4e0   :  { %v1055_v25 = vpop.eup %1054 }
 0x4e1   :  { %675 = vmatmul.f32.vlgmr.msra.gmra.mxu1 %v1055_v25  ;;  %v1057_v43 = vpop.eup %1056 }
 0x4e2   :  { %v1059_v44 = vpop.eup %1058 }
 0x4e3   :  { %v1061_v45 = vpop.eup %1060 }
 0x4e9   :  { %678 = vmatmul.f32.gmra.mxu1 %v1057_v43 }
 0x4f1   :  { %681 = vmatmul.f32.gmra.mxu1 %v1059_v44 }
 0x4f9   :  { %684 = vmatmul.f32.gmra.mxu1 %v1061_v45  ;;  %v870_v45 = vld [vmem:[#allocation10 + $0x78] sm:$0xff] }
 0x4fa   :  { %875 = vmatpush.msra.mxu0 %v870_v45 }
 0x55e   :  { %v676_v46 = vpop.f32.mrf.mxu1 }
 0x55f   :  { %693 = vperm.xlu2 %992, %v676_v46  }
 0x566   :  { %v679_v47 = vpop.f32.mrf.mxu1 }
 0x567   :  { %696 = vperm.xlu0 %990, %v679_v47  }
 0x56e   :  { %v682_v48 = vpop.f32.mrf.mxu1 }
 0x56f   :  { %699 = vperm.xlu2 %992, %v682_v48  }
 0x576   :  { %v685_v49 = vpop.f32.mrf.mxu1 }
 0x577   :  { %702 = vperm.xlu0 %990, %v685_v49  }
 0x5b9   :  { %v694_v27 = vpop.permute.xlu2 %693 }
 0x5ba   :  { %v704_v16 = vperm.slane %v694_v27, %v1492_v8  ;;  %v865_v27 = vld [vmem:[#allocation10 + $0x50] sm:$0xff] }
 0x5c9   :  { %v700_v13 = vpop.permute.xlu2 %699 }
 0x5ca   :  { %v707_v17 = vperm.slane %v700_v13, %v1492_v8 }
 0x5d9   :  { %v697_v12 = vpop.permute.xlu0 %696 }
 0x5da   :  { %v705_v14 = vperm.slane %v697_v12, %v1495_v9  ;;  %v864_v12 = vld [vmem:[#allocation10 + $0x48] sm:$0xff] }
 0x5dc   :  { %v706_v19 = vsel %vm388_vm1, %v705_v14, %v704_v16  ;;  %v863_v14 = vld [vmem:[#allocation10 + $0x40] sm:$0xff]  ;;  %v861_v16 = vld [vmem:[#allocation10 + $0x30] sm:$0xff] }
 0x5e9   :  { %v703_v15 = vpop.permute.xlu0 %702 }
 0x5ea   :  { %v708_v18 = vperm.slane %v703_v15, %v1495_v9  ;;  %v862_v15 = vld [vmem:[#allocation10 + $0x38] sm:$0xff] }
 0x5ec   :  { %v709_v21 = vsel %vm388_vm1, %v708_v18, %v707_v17 }
 0x5ed   :  { %v710_v22 = vsel %vm393_vm2, %v709_v21, %v706_v19 }
 0x5ee   :  { %v712_v23 = vsel %vm396_vm3, %v710_v22, -inf }
 0x5ef   :  { %713 = vmax.xlane.f32.xlu2 %v712_v23 }
 0x662   :  { %v714_v24 = vpop.xlane.xlu2 %713 }
 0x663   :  { %v716_v28 = vperm.slane %v714_v24, 0  ;;  %v717_v29 = vperm.slane %v714_v24, 1 }
 0x665   :  { %v720_v30 = vsub.f32 %v676_v46, %v716_v28  ;;  %v721_v31 = vsub.f32 %v679_v47, %v716_v28  ;;  %v722_v34 = vsub.f32 %v682_v48, %v717_v29  ;;  %v723_v35 = vsub.f32 %v685_v49, %v717_v29  ;;  %v869_v46 = vld [vmem:[#allocation10 + $0x70] sm:$0xff]  ;;  %v868_v47 = vld [vmem:[#allocation10 + $0x68] sm:$0xff]  ;;  %v867_v48 = vld [vmem:[#allocation10 + $0x60] sm:$0xff] }
 0x666   :  { %876 = vmatpush.msra.mxu0 %v869_v46  ;;  %v866_v49 = vld [vmem:[#allocation10 + $0x58] sm:$0xff] }
 0x667   :  { %v724_v32 = vmul.f32 1.442695, %v720_v30  ;;  %v726_v33 = vmul.f32 1.442695, %v721_v31  ;;  %v728_v36 = vmul.f32 1.442695, %v722_v34 }
 0x668   :  { %v730_v37 = vmul.f32 1.442695, %v723_v35  ;;  %877 = vmatpush.msra.mxu0 %v868_v47  ;;  %v860_v30 = vld [vmem:[#allocation10 + $0x28] sm:$0xff]  ;;  %v859_v31 = vld [vmem:[#allocation10 + $0x20] sm:$0xff] }
 0x669   :  { %1062 = vpow2.f32 %v724_v32  ;;  %v858_v32 = vld [vmem:[#allocation10 + $0x18] sm:$0xff]  ;;  %v856_v34 = vld [vmem:[#allocation10 + $0x8] sm:$0xff]  ;;  %v855_v35 = vld [vmem:[#allocation10] sm:$0xff] }
 0x66a   :  { %1064 = vpow2.f32 %v726_v33  ;;  %878 = vmatpush.msra.mxu0 %v867_v48  ;;  %v857_v33 = vld [vmem:[#allocation10 + $0x10] sm:$0xff] }
 0x66b   :  { %1066 = vpow2.f32 %v728_v36  ;;  %v911_v36 = vld [vmem:[#allocation11 + $0x78] sm:$0xff] }
 0x66c   :  { %1068 = vpow2.f32 %v730_v37  ;;  %879 = vmatpush.msra.mxu0 %v866_v49  ;;  %v910_v37 = vld [vmem:[#allocation11 + $0x70] sm:$0xff]  ;;  %916 = vmatpush.msrb.mxu2 %v911_v36 }
 0x66e   :  { %880 = vmatpush.msra.mxu0 %v865_v27  ;;  %917 = vmatpush.msrb.mxu2 %v910_v37 }
 0x66f   :  { %v1063_v38 = vpop.eup %1062 }
 0x670   :  { %v1065_v39 = vpop.eup %1064  ;;  %737 = vperm.xlu1 %991, %v1063_v38   ;;  %881 = vmatpush.msra.mxu0 %v864_v12 }
 0x671   :  { %740 = vperm.xlu0 %990, %v1065_v39   ;;  %v1067_v50 = vpop.eup %1066 }
 0x672   :  { %v1069_v51 = vpop.eup %1068  ;;  %882 = vmatpush.msra.mxu0 %v863_v14 }
 0x674   :  { %883 = vmatpush.msra.mxu0 %v862_v15 }
 0x676   :  { %884 = vmatpush.msra.mxu0 %v861_v16 }
 0x678   :  { %743 = vperm.xlu1 %991, %v1067_v50   ;;  %885 = vmatpush.msra.mxu0 %v860_v30 }
 0x679   :  { %746 = vperm.xlu0 %990, %v1069_v51  }
 0x67a   :  { %886 = vmatpush.msra.mxu0 %v859_v31 }
 0x67c   :  { %887 = vmatpush.msra.mxu0 %v858_v32 }
 0x67e   :  { %888 = vmatpush.msra.mxu0 %v857_v33 }
 0x680   :  { %889 = vmatpush.msra.mxu0 %v856_v34 }
 0x682   :  { %890 = vmatpush.msra.mxu0 %v855_v35 }
 0x6e2   :  { %v738_v52 = vpop.permute.xlu1 %737 }
 0x6e3   :  { %v741_v53 = vpop.permute.xlu0 %740  ;;  %v748_v55 = vperm.slane %v738_v52, %v1492_v8  ;;  %v903_v52 = vld [vmem:[#allocation11 + $0x38] sm:$0xff] }
 0x6e4   :  { %v749_v54 = vperm.slane %v741_v53, %v1495_v9  ;;  %v902_v53 = vld [vmem:[#allocation11 + $0x30] sm:$0xff] }
 0x6e6   :  { %v750_v0 = vsel %vm388_vm1, %v749_v54, %v748_v55  ;;  %v901_v54 = vld [vmem:[#allocation11 + $0x28] sm:$0xff]  ;;  %v900_v55 = vld [vmem:[#allocation11 + $0x20] sm:$0xff] }
 0x6ea   :  { %v744_v56 = vpop.permute.xlu1 %743 }
 0x6eb   :  { %v747_v57 = vpop.permute.xlu0 %746  ;;  %v751_v58 = vperm.slane %v744_v56, %v1492_v8  ;;  %v899_v56 = vld [vmem:[#allocation11 + $0x18] sm:$0xff] }
 0x6ec   :  { %v752_v63 = vperm.slane %v747_v57, %v1495_v9 }
 0x6ee   :  { %v753_v1 = vsel %vm388_vm1, %v752_v63, %v751_v58 }
 0x6ef   :  { %v754_v2 = vsel %vm393_vm2, %v753_v1, %v750_v0 }
 0x6f0   :  { %v756_v4 = vsel %vm396_vm3, %v754_v2, 0.0  ;;  %v898_v2 = vld [vmem:[#allocation11 + $0x10] sm:$0xff] }
 0x6f1   :  { %757 = vadd.xlane.f32.xlu1 %v756_v4  ;;  %v897_v4 = vld [vmem:[#allocation11 + $0x8] sm:$0xff] }
 0x764   :  { %v758_v3 = vpop.xlane.xlu1 %757 }
 0x765   :  { %1070 = vrcp.f32 %v758_v3  ;;  %v770_v60 = vand.u32 2147483648, %v758_v3  ;;  %v768_v10 = vand.u32 2147483647, %v758_v3  ;;  %vm764_vm10 = vweird.f32 %v758_v3 }
 0x767   :  { %v771_v7 = vor.u32 1.1754944e-38, %v770_v60  ;;  %vm769_vm12 = vcmp.eq.f32.partialorder %v768_v10, 8.507059e+37 }
 0x76b   :  { %v1071_v5 = vpop.eup %1070 }
 0x76c   :  { %v760_v61 = vmul.f32 %v1071_v5, %v758_v3  ;;  %vm765_vm9 = vweird.f32 %v1071_v5  ;;  %v896_v3 = vld [vmem:[#allocation11] sm:$0xff] }
 0x76d   :  { %vm766_vm11 = vmor %vm764_vm10, %vm765_vm9 }
 0x76e   :  { %v761_v59 = vsub.f32 1.0, %v760_v61 }
 0x770   :  { %v762_v62 = vmul.f32 %v1071_v5, %v761_v59 }
 0x772   :  { %v763_v6 = vadd.f32 %v1071_v5, %v762_v62  ;;  %v1035_v62 = vld [vmem:[%s1656_s11] ss:$0 sm:$0xff] }
 0x774   :  { %v767_v11 = vsel %vm766_vm11, %v1071_v5, %v763_v6  ;;  %v1034_v5 = vld [vmem:[%s1654_s9] ss:$0 sm:$0xff] }
 0x775   :  { %v772_v20 = vsel %vm769_vm12, %v771_v7, %v767_v11 }
 0x776   :  { %v776_v25 = vperm.slane %v772_v20, 1  ;;  %v775_v41 = vperm.slane %v772_v20, 0 }
 0x778   :  { %v781_v42 = vmul.f32 %v1067_v50, %v776_v25  ;;  %v780_v43 = vmul.f32 %v1065_v39, %v775_v41  ;;  %v782_v26 = vmul.f32 %v1069_v51, %v776_v25  ;;  %v779_v44 = vmul.f32 %v1063_v38, %v775_v41  ;;  %v907_v38 = vld [vmem:[#allocation11 + $0x58] sm:$0xff]  ;;  %v906_v39 = vld [vmem:[#allocation11 + $0x50] sm:$0xff]  ;;  %v905_v50 = vld [vmem:[#allocation11 + $0x48] sm:$0xff] }
 0x779   :  { %v904_v51 = vld [vmem:[#allocation11 + $0x40] sm:$0xff] }
 0x77a   :  { %819 = vperm.xlu0 %990, %v781_v42   ;;  %789 = vperm.xlu2 %992, %v780_v43  }
 0x782   :  { %822 = vperm.xlu0 %990, %v782_v26  }
 0x78a   :  { %786 = vperm.xlu0 %990, %v779_v44  }
 0x7d4   :  { %v790_v22 = vpop.permute.xlu2 %789 }
 0x7d5   :  { %v792_v24 = vperm.slane %v790_v22, %v1495_v9 }
 0x7ec   :  { %v820_v13 = vpop.permute.xlu0 %819 }
 0x7ed   :  { %v824_v18 = vperm.slane %v820_v13, %v1492_v8 }
 0x7f4   :  { %v823_v17 = vpop.permute.xlu0 %822 }
 0x7f5   :  { %v825_v19 = vperm.slane %v823_v17, %v1495_v9  ;;  %v908_v9 = vld [vmem:[#allocation11 + $0x60] sm:$0xff] }
 0x7f7   :  { %v826_v21 = vsel %vm388_vm1, %v825_v19, %v824_v18 }
 0x7f8   :  { %974 = vmatmul.msk.f32.vlgmr.msrb.gmra.mxu3 %vm479_vm8, %v826_v21 }
 0x7fc   :  { %v787_v23 = vpop.permute.xlu0 %786 }
 0x7fd   :  { %v791_v28 = vperm.slane %v787_v23, %v1492_v8  ;;  %v909_v8 = vld [vmem:[#allocation11 + $0x68] sm:$0xff] }
 0x7fe   :  { %918 = vmatpush.msrb.mxu2 %v909_v8 }
 0x7ff   :  { %v793_v29 = vsel %vm388_vm1, %v792_v24, %v791_v28 }
 0x800   :  { %973 = vmatmul.msk.f32.vlgmr.msra.gmra.mxu2 %vm479_vm8, %v793_v29 }
 0x801   :  { %919 = vmatpush.msrb.mxu2 %v908_v9 }
 0x803   :  { %920 = vmatpush.msrb.mxu2 %v907_v38 }
 0x805   :  { %921 = vmatpush.msrb.mxu2 %v906_v39 }
 0x807   :  { %922 = vmatpush.msrb.mxu2 %v905_v50 }
 0x809   :  { %923 = vmatpush.msrb.mxu2 %v904_v51 }
 0x80b   :  { %924 = vmatpush.msrb.mxu2 %v903_v52 }
 0x80d   :  { %925 = vmatpush.msrb.mxu2 %v902_v53 }
 0x80f   :  { %926 = vmatpush.msrb.mxu2 %v901_v54 }
 0x811   :  { %927 = vmatpush.msrb.mxu2 %v900_v55 }
 0x813   :  { %928 = vmatpush.msrb.mxu2 %v899_v56 }
 0x815   :  { %929 = vmatpush.msrb.mxu2 %v898_v2 }
 0x817   :  { %930 = vmatpush.msrb.mxu2 %v897_v4 }
 0x819   :  { %931 = vmatpush.msrb.mxu2 %v896_v3 }
 0x87b   :  { %v846_v57 = vpop.f32.mrf.mxu3 }
 0x87c   :  { %v851_v58 = vrot.slane %v846_v57, 7 }
 0x883   :  { %v813_v63 = vpop.f32.mrf.mxu2 }
 0x884   :  { %v852_v0 = vsel %vm393_vm2, %v851_v58, %v813_v63 }
 0x885   :  { %v854_v1 = vadd.f32 %v852_v0, %v1604_v40 }
 0x887   :  { %891 = vmatmul.f32.vlgmr.msra.gmra.mxu0 %v854_v1 }
 0x904   :  { %v892_v61 = vpop.f32.mrf.mxu0 }
 0x905   :  { %v893_v59 = vadd.f32 %v1034_v5, %v892_v61 }
 0x907   :  { %v895_v60 = vmax.f32 %v893_v59, 0.0 }
 0x909   :  { %932 = vmatmul.f32.vlgmr.msrb.gmra.mxu2 %v895_v60 }
 0x98c   :  { %v933_v40 = vpop.f32.mrf.mxu2 }
 0x98d   :  { %v934_v10 = vadd.f32 %v1035_v62, %v933_v40 }
 0x98f   :  { %936 = vst [vmem:[#allocation13] sm:$0x3] %v934_v10 }
 0x990   :  { %947 = dma.vmem_to_hbm [thread:$0]  %s943_s13, 32, %s945_s3, [#allocation4]  }
 0x991   :  { %1248 = dma.done.wait [#allocation4], 32  }
 0x992   :  { %1249 = vsyncadd [#allocation4], 4294967264 }
 0x993   :  { %952 = vsyncpa [#allocation3], 1 }
 0x994   :  { %953 = vsyncpa [#allocation6], 1 }
 0x995   :  { %954 = vsyncpa [#allocation9], 1 }
 0x996   :  { %955 = vsyncpa [#allocation12], 1 }
 0x997   :  { %956 = vsyncpa [#allocation4], 1 }

</bundles_post_ra>
